<compile_context>
chip_gen: v7x
topology: tpu7x:2x2x1
jax: 0.10.0
libtpu: 0.0.40
codegen_flags: <defaults>
</compile_context>

<pallas_src>
import jax
import jax.numpy as jnp
from jax import lax
from jax.experimental import pallas as pl
from jax.experimental.pallas import tpu as pltpu

EPS = 1e-5


def _round_up(x, m):
    return (x + m - 1) // m * m


# ---------------------------------------------------------------------------
# Fused BasicBlock kernel factory (one grid step == one image, all in VMEM)
# ---------------------------------------------------------------------------
def _make_block_kernel(*, s, ho, wo, cin_p, cp, equal_in_out, compute_dtype):
    hop, wop = ho + 2, wo + 2

    def conv3x3_phases(xph_ref, w_ref):
        # sum over 9 taps of (Ho*Wo, Cin_p) @ (Cin_p, Cp); f32 accumulation.
        acc = jnp.zeros((ho * wo, cp), jnp.float32)
        for kh in range(3):
            for kw in range(3):
                p = (kh % s) * s + (kw % s)          # phase holding this tap
                r0, c0 = kh // s, kw // s            # window offset in the phase
                a = xph_ref[p, r0:r0 + ho, c0:c0 + wo, :]
                a = a.reshape(ho * wo, cin_p).astype(compute_dtype)
                acc = acc + jnp.dot(a, w_ref[kh * 3 + kw],
                                    preferred_element_type=jnp.float32)
        return acc

    def conv3x3_scratch(h1pad_ref, w_ref):
        acc = jnp.zeros((ho * wo, cp), jnp.float32)
        for kh in range(3):
            for kw in range(3):
                a = h1pad_ref[kh:kh + ho, kw:kw + wo, :]
                a = a.reshape(ho * wo, cp).astype(compute_dtype)
                acc = acc + jnp.dot(a, w_ref[kh * 3 + kw],
                                    preferred_element_type=jnp.float32)
        return acc

    def stage1(xph_ref, w1_ref, s2_ref, b2_ref, h1pad_ref):
        acc1 = conv3x3_phases(xph_ref, w1_ref)
        # bn2 + relu2 epilogue in f32 (v5e-friendly).
        h1 = jnp.maximum(acc1 * s2_ref[...] + b2_ref[...], 0.0)
        # conv1 output stays resident in VMEM, zero-padded by 1 for conv2.
        # (Zero every step: scratch is uninitialized and megacore splits the
        #  grid, so step-0-only init would be wrong on the second core.)
        h1pad_ref[...] = jnp.zeros_like(h1pad_ref)
        h1pad_ref[1:1 + ho, 1:1 + wo, :] = h1.reshape(ho, wo, cp)

    if equal_in_out:
        def kernel(xph_ref, res_ref, w1_ref, w2_ref, s2_ref, b2_ref,
                   o_ref, h1pad_ref):
            stage1(xph_ref, w1_ref, s2_ref, b2_ref, h1pad_ref)
            acc2 = conv3x3_scratch(h1pad_ref, w2_ref)
            res = res_ref[...].reshape(ho * wo, cp)            # identity shortcut
            o_ref[...] = (acc2 + res).reshape(ho, wo, cp).astype(o_ref.dtype)
    else:
        # x_act[ho*s, wo*s, :] == x_pad[ho*s + 1, wo*s + 1, :] -> phase / offset:
        p_sc = (1 % s) * s + (1 % s)
        o_sc = 1 // s

        def kernel(xph_ref, w1_ref, w2_ref, wsc_ref, s2_ref, b2_ref,
                   o_ref, h1pad_ref):
            stage1(xph_ref, w1_ref, s2_ref, b2_ref, h1pad_ref)
            acc2 = conv3x3_scratch(h1pad_ref, w2_ref)
            xs = xph_ref[p_sc, o_sc:o_sc + ho, o_sc:o_sc + wo, :]  # 1x1 shortcut
            xs = xs.reshape(ho * wo, cin_p).astype(compute_dtype)
            acc2 = acc2 + jnp.dot(xs, wsc_ref[...],
                                  preferred_element_type=jnp.float32)
            o_ref[...] = acc2.reshape(ho, wo, cp).astype(o_ref.dtype)

    return kernel


# ---------------------------------------------------------------------------
# BN folding helper (eval-mode BN -> per-channel scale/shift)
# ---------------------------------------------------------------------------
def _bn_fold(gamma, beta, mean, var):
    scale = gamma / jnp.sqrt(var + EPS)
    shift = beta - mean * scale
    return scale, shift


# ---------------------------------------------------------------------------
# BasicBlock forward
# ---------------------------------------------------------------------------
def basic_block_forward(x_nchw, params, stride, *, compute_dtype=jnp.float32):
    n, cin, hi, wi = x_nchw.shape
    cout = params["w1_oihw"].shape[0]
    equal_in_out = cin == cout
    s = int(stride)
    # torch module only adds the identity when in==out planes; that implicitly
    # requires stride==1 for the spatial shapes of the add to match.
    assert not (equal_in_out and s != 1), "identity shortcut requires stride == 1"
    assert hi % s == 0 and wi % s == 0, "spatial dims must be divisible by stride"

    ho = (hi - 1) // s + 1            # = (hi + 2 - 3)//s + 1 (k=3, pad=1)
    wo = (wi - 1) // s + 1
    s2 = s * s
    hph, wph = (hi + 2) // s, (wi + 2) // s   # per-phase padded dims

    cin_p = _round_up(cin, 8)
    # lane-dense Cout padding only when the byte overhead is <= 25%
    cp128 = _round_up(cout, 128)
    cp = cp128 if (cout >= 128 and cp128 * 4 <= cout * 5) else _round_up(cout, 8)

    scale1, shift1 = _bn_fold(*params["bn1"])
    scale2, shift2 = _bn_fold(*params["bn2"])

    # bn1 + relu1 + spatial pad + stride phase-split, one fused XLA pass.
    x_nhwc = jnp.transpose(x_nchw, (0, 2, 3, 1)).astype(jnp.float32)
    x_act = jnp.maximum(x_nhwc * scale1 + shift1, 0.0)
    if cin_p != cin:
        x_act = jnp.pad(x_act, ((0, 0), (0, 0), (0, 0), (0, cin_p - cin)))
    xp = jnp.pad(x_act, ((0, 0), (1, 1), (1, 1), (0, 0)))
    phases = [xp[:, pr::s, pc::s, :] for pr in range(s) for pc in range(s)]
    x_ph = jnp.stack(phases, axis=1).reshape(n * s2, hph, wph, cin_p)

    # torch (Cout, Cin, 3, 3) -> per-tap (9, K, Cp), zero-padded.
    def to_taps(w_oihw, k_in, k_in_p):
        t = jnp.transpose(w_oihw, (2, 3, 1, 0)).reshape(9, k_in, cout)
        t = jnp.pad(t, ((0, 0), (0, k_in_p - k_in), (0, cp - cout)))
        return t.astype(compute_dtype)

    w1_t = to_taps(params["w1_oihw"], cin, cin_p)
    w2_t = to_taps(params["w2_oihw"], cout, cp)
    sc2 = jnp.pad(scale2, (0, cp - cout)).reshape(1, cp).astype(jnp.float32)
    sh2 = jnp.pad(shift2, (0, cp - cout)).reshape(1, cp).astype(jnp.float32)

    kernel = _make_block_kernel(s=s, ho=ho, wo=wo, cin_p=cin_p, cp=cp,
                                equal_in_out=equal_in_out,
                                compute_dtype=compute_dtype)

    x_ph_spec = pl.BlockSpec((s2, hph, wph, cin_p), lambda i: (i, 0, 0, 0))
    out_spec = pl.BlockSpec((None, ho, wo, cp), lambda i: (i, 0, 0, 0))

    def const_spec(shape, single_buffer):
        r = len(shape)
        idx = lambda i: (0,) * r
        if single_buffer and hasattr(pl, "Buffered"):
            # constant index_map -> single-buffer the weights (halves weight VMEM)
            return pl.BlockSpec(shape, idx, pipeline_mode=pl.Buffered(1))
        return pl.BlockSpec(shape, idx)

    if equal_in_out:
        res = x_nhwc if cp == cout else jnp.pad(
            x_nhwc, ((0, 0), (0, 0), (0, 0), (0, cp - cout)))
        row_args = [x_ph, res]
        row_specs = [x_ph_spec,
                     pl.BlockSpec((None, ho, wo, cp), lambda i: (i, 0, 0, 0))]
        const_args = [w1_t, w2_t, sc2, sh2]
        proj_flops = 0
    else:
        wsc = params["wsc_oihw"][:, :, 0, 0].T                      # (Cin, Cout)
        wsc = jnp.pad(wsc, ((0, cin_p - cin), (0, cp - cout))).astype(compute_dtype)
        row_args = [x_ph]
        row_specs = [x_ph_spec]
        const_args = [w1_t, w2_t, wsc, sc2, sh2]
        proj_flops = 2 * ho * wo * cin_p * cp

    # --- VMEM budget derived from the actual block shapes -------------------
    const_bytes = sum(int(a.size) * a.dtype.itemsize for a in const_args)
    xblk = s2 * hph * wph * cin_p * 4
    oblk = ho * wo * cp * 4
    rblk = oblk if equal_in_out else 0
    scratch_bytes = (ho + 2) * (wo + 2) * cp * 4
    vmem_est = 2 * (xblk + rblk + oblk) + const_bytes + scratch_bytes
    vmem_limit = int(max(2 * vmem_est + (4 << 20), 32 << 20))

    flops = n * (2 * ho * wo * 9 * cp * (cin_p + cp) + proj_flops)
    bytes_accessed = (sum(int(a.size) * a.dtype.itemsize for a in row_args)
                      + const_bytes + n * ho * wo * cp * 4)
    cost = pl.CostEstimate(flops=int(flops), transcendentals=0,
                           bytes_accessed=int(bytes_accessed))

    def run(single_buffer_weights):
        in_specs = row_specs + [const_spec(a.shape, single_buffer_weights)
                                for a in const_args]
        return pl.pallas_call(
            kernel,
            out_shape=jax.ShapeDtypeStruct((n, ho, wo, cp), jnp.float32),
            grid_spec=pltpu.PrefetchScalarGridSpec(
                num_scalar_prefetch=0,
                grid=(n,),
                in_specs=in_specs,
                out_specs=out_spec,
                scratch_shapes=[pltpu.VMEM((ho + 2, wo + 2, cp), jnp.float32)],
            ),
            compiler_params=pltpu.CompilerParams(
                dimension_semantics=("parallel",),   # batch tiles -> both TCs on v7x
                vmem_limit_bytes=vmem_limit,
            ),
            cost_estimate=cost,
        )(*row_args, *const_args)

    try:
        out = run(True)           # single-buffered weights
    except Exception:             # pl.Buffered(1) unsupported -> default buffering
        out = run(False)

    if cp != cout:
        out = out[..., :cout]     # strip lane-padding (padded rows never reused)
    return jnp.transpose(out, (0, 3, 1, 2))          # back to NCHW


# ---------------------------------------------------------------------------
# Deterministic parameter init + pure-JAX reference
# ---------------------------------------------------------------------------
def init_params(key, in_planes, out_planes):
    ks = jax.random.split(key, 11)

    def bn_params(kg, kb, km, kv, c):
        gamma = 1.0 + 0.1 * jax.random.normal(kg, (c,), jnp.float32)
        beta = 0.1 * jax.random.normal(kb, (c,), jnp.float32)
        mean = 0.1 * jax.random.normal(km, (c,), jnp.float32)
        var = 1.0 + 0.1 * jnp.abs(jax.random.normal(kv, (c,), jnp.float32))
        return (gamma, beta, mean, var)

    params = {
        "bn1": bn_params(ks[0], ks[1], ks[2], ks[3], in_planes),
        "bn2": bn_params(ks[4], ks[5], ks[6], ks[7], out_planes),
        "w1_oihw": jax.random.normal(ks[8], (out_planes, in_planes, 3, 3), jnp.float32)
        * (2.0 / (9 * out_planes)) ** 0.5,
        "w2_oihw": jax.random.normal(ks[9], (out_planes, out_planes, 3, 3), jnp.float32)
        * (2.0 / (9 * out_planes)) ** 0.5,
    }
    if in_planes != out_planes:
        params["wsc_oihw"] = jax.random.normal(
            ks[10], (out_planes, in_planes, 1, 1), jnp.float32
        ) * (2.0 / out_planes) ** 0.5
    return params


def reference_forward(x_nchw, params, stride):
    def bn(x, g, b, m, v):
        inv = 1.0 / jnp.sqrt(v + EPS)
        return (x - m[None, :, None, None]) * inv[None, :, None, None] * g[
            None, :, None, None
        ] + b[None, :, None, None]

    def conv(x, w, s, p):
        return lax.conv_general_dilated(
            x, w, (s, s), [(p, p), (p, p)],
            dimension_numbers=("NCHW", "OIHW", "NCHW"),
            precision=lax.Precision.HIGHEST,
        )

    in_planes = x_nchw.shape[1]
    out_planes = params["w1_oihw"].shape[0]
    equal_in_out = in_planes == out_planes

    x_act = jax.nn.relu(bn(x_nchw, *params["bn1"]))
    out = jax.nn.relu(bn(conv(x_act, params["w1_oihw"], stride, 1), *params["bn2"]))
    out = conv(out, params["w2_oihw"], 1, 1)
    if equal_in_out:
        return x_nchw + out
    return conv(x_act, params["wsc_oihw"], stride, 0) + out


# ---------------------------------------------------------------------------
if __name__ == "__main__":
    key = jax.random.PRNGKey(0)
    kx1, kp1, kx2, kp2 = jax.random.split(key, 4)

    # Case 1: in_planes != out_planes, stride 2 (1x1 shortcut fused into the kernel)
    N, Cin, H, W, Cout, stride = 2, 4, 16, 16, 8, 2
    x1 = jax.random.normal(kx1, (N, Cin, H, W), jnp.float32)
    p1 = init_params(kp1, Cin, Cout)
    out1 = jax.block_until_ready(basic_block_forward(x1, p1, stride))
    ref1 = reference_forward(x1, p1, stride)
    assert out1.shape == (N, Cout, H // stride, W // stride), out1.shape
    assert jnp.allclose(out1, ref1, rtol=1e-3, atol=1e-3), float(
        jnp.max(jnp.abs(out1 - ref1))
    )

    # Case 2: in_planes == out_planes, stride 1 (identity shortcut)
    C2 = 8
    x2 = jax.random.normal(kx2, (N, C2, H, W), jnp.float32)
    p2 = init_params(kp2, C2, C2)
    out2 = jax.block_until_ready(basic_block_forward(x2, p2, 1))
    ref2 = reference_forward(x2, p2, 1)
    assert out2.shape == (N, C2, H, W), out2.shape
    assert jnp.allclose(out2, ref2, rtol=1e-3, atol=1e-3), float(
        jnp.max(jnp.abs(out2 - ref2))
    )

    # Case 3: bf16 MXU operands (f32 accumulation / epilogue) — loose tolerance.
    out3 = jax.block_until_ready(
        basic_block_forward(x1, p1, stride, compute_dtype=jnp.bfloat16)
    )
    assert jnp.allclose(out3, ref1, rtol=5e-2, atol=5e-2), float(
        jnp.max(jnp.abs(out3 - ref1))
    )

    print("KERNEL_OK")
</pallas_src>

<mosaic_0001>
module attributes {stable_mosaic.version = 11 : i64} {
  func.func @kernel(%arg0: i32, %arg1: memref<4x9x9x8xf32, #tpu.memory_space<vmem>>, %arg2: memref<9x8x8xf32, #tpu.memory_space<vmem>>, %arg3: memref<9x8x8xf32, #tpu.memory_space<vmem>>, %arg4: memref<8x8xf32, #tpu.memory_space<vmem>>, %arg5: memref<1x8xf32, #tpu.memory_space<vmem>>, %arg6: memref<1x8xf32, #tpu.memory_space<vmem>>, %arg7: memref<1x8x8x8xf32, #tpu.memory_space<vmem>>, %arg8: memref<10x10x8xf32, #tpu.memory_space<vmem>>) attributes {dimension_semantics = [#tpu.dimension_semantics<parallel>], iteration_bounds = array<i64: 2>, scalar_prefetch = 0 : i64, scratch_operands = 1 : i64, tpu.core_type = #tpu.core_type<tc>, window_params = [{transform_indices = @transform_0, window_bounds = array<i64: 4, 9, 9, 8>}, {pipeline_mode = #tpu.pipeline_mode<synchronous>, transform_indices = @transform_1, window_bounds = array<i64: 9, 8, 8>}, {pipeline_mode = #tpu.pipeline_mode<synchronous>, transform_indices = @transform_2, window_bounds = array<i64: 9, 8, 8>}, {pipeline_mode = #tpu.pipeline_mode<synchronous>, transform_indices = @transform_3, window_bounds = array<i64: 8, 8>}, {pipeline_mode = #tpu.pipeline_mode<synchronous>, transform_indices = @transform_4, window_bounds = array<i64: 1, 8>}, {pipeline_mode = #tpu.pipeline_mode<synchronous>, transform_indices = @transform_5, window_bounds = array<i64: 1, 8>}, {transform_indices = @transform_6, window_bounds = array<i64: 1, 8, 8, 8>}]} {
    %cst = arith.constant 0.000000e+00 : f32
    %0 = vector.broadcast %cst : f32 to vector<64x8xf32>
    %c0 = arith.constant 0 : index
    %c0_0 = arith.constant 0 : index
    %c0_1 = arith.constant 0 : index
    %c0_2 = arith.constant 0 : index
    %1 = vector.load %arg1[%c0, %c0_0, %c0_1, %c0_2] : memref<4x9x9x8xf32, #tpu.memory_space<vmem>>, vector<1x8x8x8xf32>
    %2 = vector.shape_cast %1 : vector<1x8x8x8xf32> to vector<8x8x8xf32>
    %3 = vector.shape_cast %2 : vector<8x8x8xf32> to vector<64x8xf32>
    %c0_3 = arith.constant 0 : index
    %c0_4 = arith.constant 0 : index
    %c0_5 = arith.constant 0 : index
    %4 = vector.load %arg2[%c0_3, %c0_4, %c0_5] : memref<9x8x8xf32, #tpu.memory_space<vmem>>, vector<1x8x8xf32>
    %5 = vector.shape_cast %4 : vector<1x8x8xf32> to vector<8x8xf32>
    %cst_6 = arith.constant dense<0.000000e+00> : vector<64x8xf32>
    %6 = tpu.matmul %3, %5, %cst_6 {dimension_numbers = #tpu.dot_dimension_numbers<[1], [0], [0], [1], [0, 0, 1, 1], [], []>} : vector<64x8xf32>, vector<8x8xf32>, vector<64x8xf32> -> vector<64x8xf32>
    %7 = arith.addf %0, %6 : vector<64x8xf32>
    %c1 = arith.constant 1 : index
    %c0_7 = arith.constant 0 : index
    %c0_8 = arith.constant 0 : index
    %c0_9 = arith.constant 0 : index
    %8 = vector.load %arg1[%c1, %c0_7, %c0_8, %c0_9] : memref<4x9x9x8xf32, #tpu.memory_space<vmem>>, vector<1x8x8x8xf32>
    %9 = vector.shape_cast %8 : vector<1x8x8x8xf32> to vector<8x8x8xf32>
    %10 = vector.shape_cast %9 : vector<8x8x8xf32> to vector<64x8xf32>
    %c1_10 = arith.constant 1 : index
    %c0_11 = arith.constant 0 : index
    %c0_12 = arith.constant 0 : index
    %11 = vector.load %arg2[%c1_10, %c0_11, %c0_12] : memref<9x8x8xf32, #tpu.memory_space<vmem>>, vector<1x8x8xf32>
    %12 = vector.shape_cast %11 : vector<1x8x8xf32> to vector<8x8xf32>
    %cst_13 = arith.constant dense<0.000000e+00> : vector<64x8xf32>
    %13 = tpu.matmul %10, %12, %cst_13 {dimension_numbers = #tpu.dot_dimension_numbers<[1], [0], [0], [1], [0, 0, 1, 1], [], []>} : vector<64x8xf32>, vector<8x8xf32>, vector<64x8xf32> -> vector<64x8xf32>
    %14 = arith.addf %7, %13 : vector<64x8xf32>
    %c0_14 = arith.constant 0 : index
    %c0_15 = arith.constant 0 : index
    %c1_16 = arith.constant 1 : index
    %c0_17 = arith.constant 0 : index
    %15 = vector.load %arg1[%c0_14, %c0_15, %c1_16, %c0_17] : memref<4x9x9x8xf32, #tpu.memory_space<vmem>>, vector<1x8x8x8xf32>
    %16 = vector.shape_cast %15 : vector<1x8x8x8xf32> to vector<8x8x8xf32>
    %17 = vector.shape_cast %16 : vector<8x8x8xf32> to vector<64x8xf32>
    %c2 = arith.constant 2 : index
    %c0_18 = arith.constant 0 : index
    %c0_19 = arith.constant 0 : index
    %18 = vector.load %arg2[%c2, %c0_18, %c0_19] : memref<9x8x8xf32, #tpu.memory_space<vmem>>, vector<1x8x8xf32>
    %19 = vector.shape_cast %18 : vector<1x8x8xf32> to vector<8x8xf32>
    %cst_20 = arith.constant dense<0.000000e+00> : vector<64x8xf32>
    %20 = tpu.matmul %17, %19, %cst_20 {dimension_numbers = #tpu.dot_dimension_numbers<[1], [0], [0], [1], [0, 0, 1, 1], [], []>} : vector<64x8xf32>, vector<8x8xf32>, vector<64x8xf32> -> vector<64x8xf32>
    %21 = arith.addf %14, %20 : vector<64x8xf32>
    %c2_21 = arith.constant 2 : index
    %c0_22 = arith.constant 0 : index
    %c0_23 = arith.constant 0 : index
    %c0_24 = arith.constant 0 : index
    %22 = vector.load %arg1[%c2_21, %c0_22, %c0_23, %c0_24] : memref<4x9x9x8xf32, #tpu.memory_space<vmem>>, vector<1x8x8x8xf32>
    %23 = vector.shape_cast %22 : vector<1x8x8x8xf32> to vector<8x8x8xf32>
    %24 = vector.shape_cast %23 : vector<8x8x8xf32> to vector<64x8xf32>
    %c3 = arith.constant 3 : index
    %c0_25 = arith.constant 0 : index
    %c0_26 = arith.constant 0 : index
    %25 = vector.load %arg2[%c3, %c0_25, %c0_26] : memref<9x8x8xf32, #tpu.memory_space<vmem>>, vector<1x8x8xf32>
    %26 = vector.shape_cast %25 : vector<1x8x8xf32> to vector<8x8xf32>
    %cst_27 = arith.constant dense<0.000000e+00> : vector<64x8xf32>
    %27 = tpu.matmul %24, %26, %cst_27 {dimension_numbers = #tpu.dot_dimension_numbers<[1], [0], [0], [1], [0, 0, 1, 1], [], []>} : vector<64x8xf32>, vector<8x8xf32>, vector<64x8xf32> -> vector<64x8xf32>
    %28 = arith.addf %21, %27 : vector<64x8xf32>
    %c3_28 = arith.constant 3 : index
    %c0_29 = arith.constant 0 : index
    %c0_30 = arith.constant 0 : index
    %c0_31 = arith.constant 0 : index
    %29 = vector.load %arg1[%c3_28, %c0_29, %c0_30, %c0_31] : memref<4x9x9x8xf32, #tpu.memory_space<vmem>>, vector<1x8x8x8xf32>
    %30 = vector.shape_cast %29 : vector<1x8x8x8xf32> to vector<8x8x8xf32>
    %31 = vector.shape_cast %30 : vector<8x8x8xf32> to vector<64x8xf32>
    %c4 = arith.constant 4 : index
    %c0_32 = arith.constant 0 : index
    %c0_33 = arith.constant 0 : index
    %32 = vector.load %arg2[%c4, %c0_32, %c0_33] : memref<9x8x8xf32, #tpu.memory_space<vmem>>, vector<1x8x8xf32>
    %33 = vector.shape_cast %32 : vector<1x8x8xf32> to vector<8x8xf32>
    %cst_34 = arith.constant dense<0.000000e+00> : vector<64x8xf32>
    %34 = tpu.matmul %31, %33, %cst_34 {dimension_numbers = #tpu.dot_dimension_numbers<[1], [0], [0], [1], [0, 0, 1, 1], [], []>} : vector<64x8xf32>, vector<8x8xf32>, vector<64x8xf32> -> vector<64x8xf32>
    %35 = arith.addf %28, %34 : vector<64x8xf32>
    %c2_35 = arith.constant 2 : index
    %c0_36 = arith.constant 0 : index
    %c1_37 = arith.constant 1 : index
    %c0_38 = arith.constant 0 : index
    %36 = vector.load %arg1[%c2_35, %c0_36, %c1_37, %c0_38] : memref<4x9x9x8xf32, #tpu.memory_space<vmem>>, vector<1x8x8x8xf32>
    %37 = vector.shape_cast %36 : vector<1x8x8x8xf32> to vector<8x8x8xf32>
    %38 = vector.shape_cast %37 : vector<8x8x8xf32> to vector<64x8xf32>
    %c5 = arith.constant 5 : index
    %c0_39 = arith.constant 0 : index
    %c0_40 = arith.constant 0 : index
    %39 = vector.load %arg2[%c5, %c0_39, %c0_40] : memref<9x8x8xf32, #tpu.memory_space<vmem>>, vector<1x8x8xf32>
    %40 = vector.shape_cast %39 : vector<1x8x8xf32> to vector<8x8xf32>
    %cst_41 = arith.constant dense<0.000000e+00> : vector<64x8xf32>
    %41 = tpu.matmul %38, %40, %cst_41 {dimension_numbers = #tpu.dot_dimension_numbers<[1], [0], [0], [1], [0, 0, 1, 1], [], []>} : vector<64x8xf32>, vector<8x8xf32>, vector<64x8xf32> -> vector<64x8xf32>
    %42 = arith.addf %35, %41 : vector<64x8xf32>
    %c0_42 = arith.constant 0 : index
    %c1_43 = arith.constant 1 : index
    %c0_44 = arith.constant 0 : index
    %c0_45 = arith.constant 0 : index
    %43 = vector.load %arg1[%c0_42, %c1_43, %c0_44, %c0_45] : memref<4x9x9x8xf32, #tpu.memory_space<vmem>>, vector<1x8x8x8xf32>
    %44 = vector.shape_cast %43 : vector<1x8x8x8xf32> to vector<8x8x8xf32>
    %45 = vector.shape_cast %44 : vector<8x8x8xf32> to vector<64x8xf32>
    %c6 = arith.constant 6 : index
    %c0_46 = arith.constant 0 : index
    %c0_47 = arith.constant 0 : index
    %46 = vector.load %arg2[%c6, %c0_46, %c0_47] : memref<9x8x8xf32, #tpu.memory_space<vmem>>, vector<1x8x8xf32>
    %47 = vector.shape_cast %46 : vector<1x8x8xf32> to vector<8x8xf32>
    %cst_48 = arith.constant dense<0.000000e+00> : vector<64x8xf32>
    %48 = tpu.matmul %45, %47, %cst_48 {dimension_numbers = #tpu.dot_dimension_numbers<[1], [0], [0], [1], [0, 0, 1, 1], [], []>} : vector<64x8xf32>, vector<8x8xf32>, vector<64x8xf32> -> vector<64x8xf32>
    %49 = arith.addf %42, %48 : vector<64x8xf32>
    %c1_49 = arith.constant 1 : index
    %c1_50 = arith.constant 1 : index
    %c0_51 = arith.constant 0 : index
    %c0_52 = arith.constant 0 : index
    %50 = vector.load %arg1[%c1_49, %c1_50, %c0_51, %c0_52] : memref<4x9x9x8xf32, #tpu.memory_space<vmem>>, vector<1x8x8x8xf32>
    %51 = vector.shape_cast %50 : vector<1x8x8x8xf32> to vector<8x8x8xf32>
    %52 = vector.shape_cast %51 : vector<8x8x8xf32> to vector<64x8xf32>
    %c7 = arith.constant 7 : index
    %c0_53 = arith.constant 0 : index
    %c0_54 = arith.constant 0 : index
    %53 = vector.load %arg2[%c7, %c0_53, %c0_54] : memref<9x8x8xf32, #tpu.memory_space<vmem>>, vector<1x8x8xf32>
    %54 = vector.shape_cast %53 : vector<1x8x8xf32> to vector<8x8xf32>
    %cst_55 = arith.constant dense<0.000000e+00> : vector<64x8xf32>
    %55 = tpu.matmul %52, %54, %cst_55 {dimension_numbers = #tpu.dot_dimension_numbers<[1], [0], [0], [1], [0, 0, 1, 1], [], []>} : vector<64x8xf32>, vector<8x8xf32>, vector<64x8xf32> -> vector<64x8xf32>
    %56 = arith.addf %49, %55 : vector<64x8xf32>
    %c0_56 = arith.constant 0 : index
    %c1_57 = arith.constant 1 : index
    %c1_58 = arith.constant 1 : index
    %c0_59 = arith.constant 0 : index
    %57 = vector.load %arg1[%c0_56, %c1_57, %c1_58, %c0_59] : memref<4x9x9x8xf32, #tpu.memory_space<vmem>>, vector<1x8x8x8xf32>
    %58 = vector.shape_cast %57 : vector<1x8x8x8xf32> to vector<8x8x8xf32>
    %59 = vector.shape_cast %58 : vector<8x8x8xf32> to vector<64x8xf32>
    %c8 = arith.constant 8 : index
    %c0_60 = arith.constant 0 : index
    %c0_61 = arith.constant 0 : index
    %60 = vector.load %arg2[%c8, %c0_60, %c0_61] : memref<9x8x8xf32, #tpu.memory_space<vmem>>, vector<1x8x8xf32>
    %61 = vector.shape_cast %60 : vector<1x8x8xf32> to vector<8x8xf32>
    %cst_62 = arith.constant dense<0.000000e+00> : vector<64x8xf32>
    %62 = tpu.matmul %59, %61, %cst_62 {dimension_numbers = #tpu.dot_dimension_numbers<[1], [0], [0], [1], [0, 0, 1, 1], [], []>} : vector<64x8xf32>, vector<8x8xf32>, vector<64x8xf32> -> vector<64x8xf32>
    %63 = arith.addf %56, %62 : vector<64x8xf32>
    %c0_63 = arith.constant 0 : index
    %c0_64 = arith.constant 0 : index
    %64 = vector.load %arg5[%c0_63, %c0_64] : memref<1x8xf32, #tpu.memory_space<vmem>>, vector<1x8xf32>
    %65 = vector.broadcast %64 : vector<1x8xf32> to vector<64x8xf32>
    %66 = arith.mulf %63, %65 : vector<64x8xf32>
    %c0_65 = arith.constant 0 : index
    %c0_66 = arith.constant 0 : index
    %67 = vector.load %arg6[%c0_65, %c0_66] : memref<1x8xf32, #tpu.memory_space<vmem>>, vector<1x8xf32>
    %68 = vector.broadcast %67 : vector<1x8xf32> to vector<64x8xf32>
    %69 = arith.addf %66, %68 : vector<64x8xf32>
    %cst_67 = arith.constant 0.000000e+00 : f32
    %70 = vector.broadcast %cst_67 : f32 to vector<64x8xf32>
    %71 = arith.maximumf %69, %70 : vector<64x8xf32>
    %cst_68 = arith.constant 0.000000e+00 : f32
    %72 = vector.broadcast %cst_68 : f32 to vector<10x10x8xf32>
    %c0_69 = arith.constant 0 : index
    %c0_70 = arith.constant 0 : index
    %c0_71 = arith.constant 0 : index
    %73 = vector.load %arg8[%c0_69, %c0_70, %c0_71] : memref<10x10x8xf32, #tpu.memory_space<vmem>>, vector<10x10x8xf32>
    tpu.vector_store %arg8[%c0_69, %c0_70, %c0_71], %72 {strides = array<i32>} : memref<10x10x8xf32, #tpu.memory_space<vmem>>, vector<10x10x8xf32>,
    %74 = vector.shape_cast %71 : vector<64x8xf32> to vector<8x8x8xf32>
    %c1_72 = arith.constant 1 : index
    %c1_73 = arith.constant 1 : index
    %c0_74 = arith.constant 0 : index
    %75 = vector.load %arg8[%c1_72, %c1_73, %c0_74] : memref<10x10x8xf32, #tpu.memory_space<vmem>>, vector<8x8x8xf32>
    tpu.vector_store %arg8[%c1_72, %c1_73, %c0_74], %74 {strides = array<i32>} : memref<10x10x8xf32, #tpu.memory_space<vmem>>, vector<8x8x8xf32>,
    %cst_75 = arith.constant 0.000000e+00 : f32
    %76 = vector.broadcast %cst_75 : f32 to vector<64x8xf32>
    %c0_76 = arith.constant 0 : index
    %c0_77 = arith.constant 0 : index
    %c0_78 = arith.constant 0 : index
    %77 = vector.load %arg8[%c0_76, %c0_77, %c0_78] : memref<10x10x8xf32, #tpu.memory_space<vmem>>, vector<8x8x8xf32>
    %78 = vector.shape_cast %77 : vector<8x8x8xf32> to vector<64x8xf32>
    %c0_79 = arith.constant 0 : index
    %c0_80 = arith.constant 0 : index
    %c0_81 = arith.constant 0 : index
    %79 = vector.load %arg3[%c0_79, %c0_80, %c0_81] : memref<9x8x8xf32, #tpu.memory_space<vmem>>, vector<1x8x8xf32>
    %80 = vector.shape_cast %79 : vector<1x8x8xf32> to vector<8x8xf32>
    %cst_82 = arith.constant dense<0.000000e+00> : vector<64x8xf32>
    %81 = tpu.matmul %78, %80, %cst_82 {dimension_numbers = #tpu.dot_dimension_numbers<[1], [0], [0], [1], [0, 0, 1, 1], [], []>} : vector<64x8xf32>, vector<8x8xf32>, vector<64x8xf32> -> vector<64x8xf32>
    %82 = arith.addf %76, %81 : vector<64x8xf32>
    %c0_83 = arith.constant 0 : index
    %c1_84 = arith.constant 1 : index
    %c0_85 = arith.constant 0 : index
    %83 = vector.load %arg8[%c0_83, %c1_84, %c0_85] : memref<10x10x8xf32, #tpu.memory_space<vmem>>, vector<8x8x8xf32>
    %84 = vector.shape_cast %83 : vector<8x8x8xf32> to vector<64x8xf32>
    %c1_86 = arith.constant 1 : index
    %c0_87 = arith.constant 0 : index
    %c0_88 = arith.constant 0 : index
    %85 = vector.load %arg3[%c1_86, %c0_87, %c0_88] : memref<9x8x8xf32, #tpu.memory_space<vmem>>, vector<1x8x8xf32>
    %86 = vector.shape_cast %85 : vector<1x8x8xf32> to vector<8x8xf32>
    %cst_89 = arith.constant dense<0.000000e+00> : vector<64x8xf32>
    %87 = tpu.matmul %84, %86, %cst_89 {dimension_numbers = #tpu.dot_dimension_numbers<[1], [0], [0], [1], [0, 0, 1, 1], [], []>} : vector<64x8xf32>, vector<8x8xf32>, vector<64x8xf32> -> vector<64x8xf32>
    %88 = arith.addf %82, %87 : vector<64x8xf32>
    %c0_90 = arith.constant 0 : index
    %c2_91 = arith.constant 2 : index
    %c0_92 = arith.constant 0 : index
    %89 = vector.load %arg8[%c0_90, %c2_91, %c0_92] : memref<10x10x8xf32, #tpu.memory_space<vmem>>, vector<8x8x8xf32>
    %90 = vector.shape_cast %89 : vector<8x8x8xf32> to vector<64x8xf32>
    %c2_93 = arith.constant 2 : index
    %c0_94 = arith.constant 0 : index
    %c0_95 = arith.constant 0 : index
    %91 = vector.load %arg3[%c2_93, %c0_94, %c0_95] : memref<9x8x8xf32, #tpu.memory_space<vmem>>, vector<1x8x8xf32>
    %92 = vector.shape_cast %91 : vector<1x8x8xf32> to vector<8x8xf32>
    %cst_96 = arith.constant dense<0.000000e+00> : vector<64x8xf32>
    %93 = tpu.matmul %90, %92, %cst_96 {dimension_numbers = #tpu.dot_dimension_numbers<[1], [0], [0], [1], [0, 0, 1, 1], [], []>} : vector<64x8xf32>, vector<8x8xf32>, vector<64x8xf32> -> vector<64x8xf32>
    %94 = arith.addf %88, %93 : vector<64x8xf32>
    %c1_97 = arith.constant 1 : index
    %c0_98 = arith.constant 0 : index
    %c0_99 = arith.constant 0 : index
    %95 = vector.load %arg8[%c1_97, %c0_98, %c0_99] : memref<10x10x8xf32, #tpu.memory_space<vmem>>, vector<8x8x8xf32>
    %96 = vector.shape_cast %95 : vector<8x8x8xf32> to vector<64x8xf32>
    %c3_100 = arith.constant 3 : index
    %c0_101 = arith.constant 0 : index
    %c0_102 = arith.constant 0 : index
    %97 = vector.load %arg3[%c3_100, %c0_101, %c0_102] : memref<9x8x8xf32, #tpu.memory_space<vmem>>, vector<1x8x8xf32>
    %98 = vector.shape_cast %97 : vector<1x8x8xf32> to vector<8x8xf32>
    %cst_103 = arith.constant dense<0.000000e+00> : vector<64x8xf32>
    %99 = tpu.matmul %96, %98, %cst_103 {dimension_numbers = #tpu.dot_dimension_numbers<[1], [0], [0], [1], [0, 0, 1, 1], [], []>} : vector<64x8xf32>, vector<8x8xf32>, vector<64x8xf32> -> vector<64x8xf32>
    %100 = arith.addf %94, %99 : vector<64x8xf32>
    %c1_104 = arith.constant 1 : index
    %c1_105 = arith.constant 1 : index
    %c0_106 = arith.constant 0 : index
    %101 = vector.load %arg8[%c1_104, %c1_105, %c0_106] : memref<10x10x8xf32, #tpu.memory_space<vmem>>, vector<8x8x8xf32>
    %102 = vector.shape_cast %101 : vector<8x8x8xf32> to vector<64x8xf32>
    %c4_107 = arith.constant 4 : index
    %c0_108 = arith.constant 0 : index
    %c0_109 = arith.constant 0 : index
    %103 = vector.load %arg3[%c4_107, %c0_108, %c0_109] : memref<9x8x8xf32, #tpu.memory_space<vmem>>, vector<1x8x8xf32>
    %104 = vector.shape_cast %103 : vector<1x8x8xf32> to vector<8x8xf32>
    %cst_110 = arith.constant dense<0.000000e+00> : vector<64x8xf32>
    %105 = tpu.matmul %102, %104, %cst_110 {dimension_numbers = #tpu.dot_dimension_numbers<[1], [0], [0], [1], [0, 0, 1, 1], [], []>} : vector<64x8xf32>, vector<8x8xf32>, vector<64x8xf32> -> vector<64x8xf32>
    %106 = arith.addf %100, %105 : vector<64x8xf32>
    %c1_111 = arith.constant 1 : index
    %c2_112 = arith.constant 2 : index
    %c0_113 = arith.constant 0 : index
    %107 = vector.load %arg8[%c1_111, %c2_112, %c0_113] : memref<10x10x8xf32, #tpu.memory_space<vmem>>, vector<8x8x8xf32>
    %108 = vector.shape_cast %107 : vector<8x8x8xf32> to vector<64x8xf32>
    %c5_114 = arith.constant 5 : index
    %c0_115 = arith.constant 0 : index
    %c0_116 = arith.constant 0 : index
    %109 = vector.load %arg3[%c5_114, %c0_115, %c0_116] : memref<9x8x8xf32, #tpu.memory_space<vmem>>, vector<1x8x8xf32>
    %110 = vector.shape_cast %109 : vector<1x8x8xf32> to vector<8x8xf32>
    %cst_117 = arith.constant dense<0.000000e+00> : vector<64x8xf32>
    %111 = tpu.matmul %108, %110, %cst_117 {dimension_numbers = #tpu.dot_dimension_numbers<[1], [0], [0], [1], [0, 0, 1, 1], [], []>} : vector<64x8xf32>, vector<8x8xf32>, vector<64x8xf32> -> vector<64x8xf32>
    %112 = arith.addf %106, %111 : vector<64x8xf32>
    %c2_118 = arith.constant 2 : index
    %c0_119 = arith.constant 0 : index
    %c0_120 = arith.constant 0 : index
    %113 = vector.load %arg8[%c2_118, %c0_119, %c0_120] : memref<10x10x8xf32, #tpu.memory_space<vmem>>, vector<8x8x8xf32>
    %114 = vector.shape_cast %113 : vector<8x8x8xf32> to vector<64x8xf32>
    %c6_121 = arith.constant 6 : index
    %c0_122 = arith.constant 0 : index
    %c0_123 = arith.constant 0 : index
    %115 = vector.load %arg3[%c6_121, %c0_122, %c0_123] : memref<9x8x8xf32, #tpu.memory_space<vmem>>, vector<1x8x8xf32>
    %116 = vector.shape_cast %115 : vector<1x8x8xf32> to vector<8x8xf32>
    %cst_124 = arith.constant dense<0.000000e+00> : vector<64x8xf32>
    %117 = tpu.matmul %114, %116, %cst_124 {dimension_numbers = #tpu.dot_dimension_numbers<[1], [0], [0], [1], [0, 0, 1, 1], [], []>} : vector<64x8xf32>, vector<8x8xf32>, vector<64x8xf32> -> vector<64x8xf32>
    %118 = arith.addf %112, %117 : vector<64x8xf32>
    %c2_125 = arith.constant 2 : index
    %c1_126 = arith.constant 1 : index
    %c0_127 = arith.constant 0 : index
    %119 = vector.load %arg8[%c2_125, %c1_126, %c0_127] : memref<10x10x8xf32, #tpu.memory_space<vmem>>, vector<8x8x8xf32>
    %120 = vector.shape_cast %119 : vector<8x8x8xf32> to vector<64x8xf32>
    %c7_128 = arith.constant 7 : index
    %c0_129 = arith.constant 0 : index
    %c0_130 = arith.constant 0 : index
    %121 = vector.load %arg3[%c7_128, %c0_129, %c0_130] : memref<9x8x8xf32, #tpu.memory_space<vmem>>, vector<1x8x8xf32>
    %122 = vector.shape_cast %121 : vector<1x8x8xf32> to vector<8x8xf32>
    %cst_131 = arith.constant dense<0.000000e+00> : vector<64x8xf32>
    %123 = tpu.matmul %120, %122, %cst_131 {dimension_numbers = #tpu.dot_dimension_numbers<[1], [0], [0], [1], [0, 0, 1, 1], [], []>} : vector<64x8xf32>, vector<8x8xf32>, vector<64x8xf32> -> vector<64x8xf32>
    %124 = arith.addf %118, %123 : vector<64x8xf32>
    %c2_132 = arith.constant 2 : index
    %c2_133 = arith.constant 2 : index
    %c0_134 = arith.constant 0 : index
    %125 = vector.load %arg8[%c2_132, %c2_133, %c0_134] : memref<10x10x8xf32, #tpu.memory_space<vmem>>, vector<8x8x8xf32>
    %126 = vector.shape_cast %125 : vector<8x8x8xf32> to vector<64x8xf32>
    %c8_135 = arith.constant 8 : index
    %c0_136 = arith.constant 0 : index
    %c0_137 = arith.constant 0 : index
    %127 = vector.load %arg3[%c8_135, %c0_136, %c0_137] : memref<9x8x8xf32, #tpu.memory_space<vmem>>, vector<1x8x8xf32>
    %128 = vector.shape_cast %127 : vector<1x8x8xf32> to vector<8x8xf32>
    %cst_138 = arith.constant dense<0.000000e+00> : vector<64x8xf32>
    %129 = tpu.matmul %126, %128, %cst_138 {dimension_numbers = #tpu.dot_dimension_numbers<[1], [0], [0], [1], [0, 0, 1, 1], [], []>} : vector<64x8xf32>, vector<8x8xf32>, vector<64x8xf32> -> vector<64x8xf32>
    %130 = arith.addf %124, %129 : vector<64x8xf32>
    %c3_139 = arith.constant 3 : index
    %c0_140 = arith.constant 0 : index
    %c0_141 = arith.constant 0 : index
    %c0_142 = arith.constant 0 : index
    %131 = vector.load %arg1[%c3_139, %c0_140, %c0_141, %c0_142] : memref<4x9x9x8xf32, #tpu.memory_space<vmem>>, vector<1x8x8x8xf32>
    %132 = vector.shape_cast %131 : vector<1x8x8x8xf32> to vector<8x8x8xf32>
    %133 = vector.shape_cast %132 : vector<8x8x8xf32> to vector<64x8xf32>
    %c0_143 = arith.constant 0 : index
    %c0_144 = arith.constant 0 : index
    %134 = vector.load %arg4[%c0_143, %c0_144] : memref<8x8xf32, #tpu.memory_space<vmem>>, vector<8x8xf32>
    %cst_145 = arith.constant dense<0.000000e+00> : vector<64x8xf32>
    %135 = tpu.matmul %133, %134, %cst_145 {dimension_numbers = #tpu.dot_dimension_numbers<[1], [0], [0], [1], [0, 0, 1, 1], [], []>} : vector<64x8xf32>, vector<8x8xf32>, vector<64x8xf32> -> vector<64x8xf32>
    %136 = arith.addf %130, %135 : vector<64x8xf32>
    %137 = vector.shape_cast %136 : vector<64x8xf32> to vector<8x8x8xf32>
    %c0_146 = arith.constant 0 : index
    %c0_147 = arith.constant 0 : index
    %c0_148 = arith.constant 0 : index
    %c0_149 = arith.constant 0 : index
    %138 = vector.load %arg7[%c0_146, %c0_147, %c0_148, %c0_149] : memref<1x8x8x8xf32, #tpu.memory_space<vmem>>, vector<1x8x8x8xf32>
    %139 = vector.shape_cast %138 : vector<1x8x8x8xf32> to vector<8x8x8xf32>
    %140 = vector.shape_cast %137 : vector<8x8x8xf32> to vector<1x8x8x8xf32>
    tpu.vector_store %arg7[%c0_146, %c0_147, %c0_148, %c0_149], %140 {strides = array<i32>} : memref<1x8x8x8xf32, #tpu.memory_space<vmem>>, vector<1x8x8x8xf32>,
    return
  }
  func.func @transform_0(%arg0: i32) -> (i32, i32, i32, i32) {
    %c0_i32 = arith.constant 0 : i32
    %c0_i32_0 = arith.constant 0 : i32
    %c0_i32_1 = arith.constant 0 : i32
    %c0_i32_2 = arith.constant 0 : i32
    return %arg0, %c0_i32, %c0_i32_0, %c0_i32_1 : i32, i32, i32, i32
  }
  func.func @transform_1(%arg0: i32) -> (i32, i32, i32) {
    %c0_i32 = arith.constant 0 : i32
    %c0_i32_0 = arith.constant 0 : i32
    %c0_i32_1 = arith.constant 0 : i32
    %c0_i32_2 = arith.constant 0 : i32
    return %c0_i32, %c0_i32_0, %c0_i32_1 : i32, i32, i32
  }
  func.func @transform_2(%arg0: i32) -> (i32, i32, i32) {
    %c0_i32 = arith.constant 0 : i32
    %c0_i32_0 = arith.constant 0 : i32
    %c0_i32_1 = arith.constant 0 : i32
    %c0_i32_2 = arith.constant 0 : i32
    return %c0_i32, %c0_i32_0, %c0_i32_1 : i32, i32, i32
  }
  func.func @transform_3(%arg0: i32) -> (i32, i32) {
    %c0_i32 = arith.constant 0 : i32
    %c0_i32_0 = arith.constant 0 : i32
    %c0_i32_1 = arith.constant 0 : i32
    return %c0_i32, %c0_i32_0 : i32, i32
  }
  func.func @transform_4(%arg0: i32) -> (i32, i32) {
    %c0_i32 = arith.constant 0 : i32
    %c0_i32_0 = arith.constant 0 : i32
    %c0_i32_1 = arith.constant 0 : i32
    return %c0_i32, %c0_i32_0 : i32, i32
  }
  func.func @transform_5(%arg0: i32) -> (i32, i32) {
    %c0_i32 = arith.constant 0 : i32
    %c0_i32_0 = arith.constant 0 : i32
    %c0_i32_1 = arith.constant 0 : i32
    return %c0_i32, %c0_i32_0 : i32, i32
  }
  func.func @transform_6(%arg0: i32) -> (i32, i32, i32, i32) {
    %c0_i32 = arith.constant 0 : i32
    %c0_i32_0 = arith.constant 0 : i32
    %c0_i32_1 = arith.constant 0 : i32
    %c0_i32_2 = arith.constant 0 : i32
    return %arg0, %c0_i32, %c0_i32_0, %c0_i32_1 : i32, i32, i32, i32
  }
}

module attributes {stable_mosaic.version = 11 : i64} {
  func.func @kernel(%arg0: i32, %arg1: memref<4x9x9x8xf32, #tpu.memory_space<vmem>>, %arg2: memref<9x8x8xf32, #tpu.memory_space<vmem>>, %arg3: memref<9x8x8xf32, #tpu.memory_space<vmem>>, %arg4: memref<8x8xf32, #tpu.memory_space<vmem>>, %arg5: memref<1x8xf32, #tpu.memory_space<vmem>>, %arg6: memref<1x8xf32, #tpu.memory_space<vmem>>, %arg7: memref<1x8x8x8xf32, #tpu.memory_space<vmem>>, %arg8: memref<10x10x8xf32, #tpu.memory_space<vmem>>) attributes {dimension_semantics = [#tpu.dimension_semantics<parallel>], iteration_bounds = array<i64: 2>, scalar_prefetch = 0 : i64, scratch_operands = 1 : i64, tpu.core_type = #tpu.core_type<tc>, window_params = [{transform_indices = @transform_0, window_bounds = array<i64: 4, 9, 9, 8>}, {pipeline_mode = #tpu.pipeline_mode<synchronous>, transform_indices = @transform_1, window_bounds = array<i64: 9, 8, 8>}, {pipeline_mode = #tpu.pipeline_mode<synchronous>, transform_indices = @transform_2, window_bounds = array<i64: 9, 8, 8>}, {pipeline_mode = #tpu.pipeline_mode<synchronous>, transform_indices = @transform_3, window_bounds = array<i64: 8, 8>}, {pipeline_mode = #tpu.pipeline_mode<synchronous>, transform_indices = @transform_4, window_bounds = array<i64: 1, 8>}, {pipeline_mode = #tpu.pipeline_mode<synchronous>, transform_indices = @transform_5, window_bounds = array<i64: 1, 8>}, {transform_indices = @transform_6, window_bounds = array<i64: 1, 8, 8, 8>}]} {
    %cst = arith.constant 0.000000e+00 : f32
    %0 = vector.broadcast %cst : f32 to vector<64x8xf32>
    %c0 = arith.constant 0 : index
    %c0_0 = arith.constant 0 : index
    %c0_1 = arith.constant 0 : index
    %c0_2 = arith.constant 0 : index
    %1 = vector.load %arg1[%c0, %c0_0, %c0_1, %c0_2] : memref<4x9x9x8xf32, #tpu.memory_space<vmem>>, vector<1x8x8x8xf32>
    %2 = vector.shape_cast %1 : vector<1x8x8x8xf32> to vector<8x8x8xf32>
    %3 = vector.shape_cast %2 : vector<8x8x8xf32> to vector<64x8xf32>
    %c0_3 = arith.constant 0 : index
    %c0_4 = arith.constant 0 : index
    %c0_5 = arith.constant 0 : index
    %4 = vector.load %arg2[%c0_3, %c0_4, %c0_5] : memref<9x8x8xf32, #tpu.memory_space<vmem>>, vector<1x8x8xf32>
    %5 = vector.shape_cast %4 : vector<1x8x8xf32> to vector<8x8xf32>
    %cst_6 = arith.constant dense<0.000000e+00> : vector<64x8xf32>
    %6 = tpu.matmul %3, %5, %cst_6 {dimension_numbers = #tpu.dot_dimension_numbers<[1], [0], [0], [1], [0, 0, 1, 1], [], []>} : vector<64x8xf32>, vector<8x8xf32>, vector<64x8xf32> -> vector<64x8xf32>
    %7 = arith.addf %0, %6 : vector<64x8xf32>
    %c1 = arith.constant 1 : index
    %c0_7 = arith.constant 0 : index
    %c0_8 = arith.constant 0 : index
    %c0_9 = arith.constant 0 : index
    %8 = vector.load %arg1[%c1, %c0_7, %c0_8, %c0_9] : memref<4x9x9x8xf32, #tpu.memory_space<vmem>>, vector<1x8x8x8xf32>
    %9 = vector.shape_cast %8 : vector<1x8x8x8xf32> to vector<8x8x8xf32>
    %10 = vector.shape_cast %9 : vector<8x8x8xf32> to vector<64x8xf32>
    %c1_10 = arith.constant 1 : index
    %c0_11 = arith.constant 0 : index
    %c0_12 = arith.constant 0 : index
    %11 = vector.load %arg2[%c1_10, %c0_11, %c0_12] : memref<9x8x8xf32, #tpu.memory_space<vmem>>, vector<1x8x8xf32>
    %12 = vector.shape_cast %11 : vector<1x8x8xf32> to vector<8x8xf32>
    %cst_13 = arith.constant dense<0.000000e+00> : vector<64x8xf32>
    %13 = tpu.matmul %10, %12, %cst_13 {dimension_numbers = #tpu.dot_dimension_numbers<[1], [0], [0], [1], [0, 0, 1, 1], [], []>} : vector<64x8xf32>, vector<8x8xf32>, vector<64x8xf32> -> vector<64x8xf32>
    %14 = arith.addf %7, %13 : vector<64x8xf32>
    %c0_14 = arith.constant 0 : index
    %c0_15 = arith.constant 0 : index
    %c1_16 = arith.constant 1 : index
    %c0_17 = arith.constant 0 : index
    %15 = vector.load %arg1[%c0_14, %c0_15, %c1_16, %c0_17] : memref<4x9x9x8xf32, #tpu.memory_space<vmem>>, vector<1x8x8x8xf32>
    %16 = vector.shape_cast %15 : vector<1x8x8x8xf32> to vector<8x8x8xf32>
    %17 = vector.shape_cast %16 : vector<8x8x8xf32> to vector<64x8xf32>
    %c2 = arith.constant 2 : index
    %c0_18 = arith.constant 0 : index
    %c0_19 = arith.constant 0 : index
    %18 = vector.load %arg2[%c2, %c0_18, %c0_19] : memref<9x8x8xf32, #tpu.memory_space<vmem>>, vector<1x8x8xf32>
    %19 = vector.shape_cast %18 : vector<1x8x8xf32> to vector<8x8xf32>
    %cst_20 = arith.constant dense<0.000000e+00> : vector<64x8xf32>
    %20 = tpu.matmul %17, %19, %cst_20 {dimension_numbers = #tpu.dot_dimension_numbers<[1], [0], [0], [1], [0, 0, 1, 1], [], []>} : vector<64x8xf32>, vector<8x8xf32>, vector<64x8xf32> -> vector<64x8xf32>
    %21 = arith.addf %14, %20 : vector<64x8xf32>
    %c2_21 = arith.constant 2 : index
    %c0_22 = arith.constant 0 : index
    %c0_23 = arith.constant 0 : index
    %c0_24 = arith.constant 0 : index
    %22 = vector.load %arg1[%c2_21, %c0_22, %c0_23, %c0_24] : memref<4x9x9x8xf32, #tpu.memory_space<vmem>>, vector<1x8x8x8xf32>
    %23 = vector.shape_cast %22 : vector<1x8x8x8xf32> to vector<8x8x8xf32>
    %24 = vector.shape_cast %23 : vector<8x8x8xf32> to vector<64x8xf32>
    %c3 = arith.constant 3 : index
    %c0_25 = arith.constant 0 : index
    %c0_26 = arith.constant 0 : index
    %25 = vector.load %arg2[%c3, %c0_25, %c0_26] : memref<9x8x8xf32, #tpu.memory_space<vmem>>, vector<1x8x8xf32>
    %26 = vector.shape_cast %25 : vector<1x8x8xf32> to vector<8x8xf32>
    %cst_27 = arith.constant dense<0.000000e+00> : vector<64x8xf32>
    %27 = tpu.matmul %24, %26, %cst_27 {dimension_numbers = #tpu.dot_dimension_numbers<[1], [0], [0], [1], [0, 0, 1, 1], [], []>} : vector<64x8xf32>, vector<8x8xf32>, vector<64x8xf32> -> vector<64x8xf32>
    %28 = arith.addf %21, %27 : vector<64x8xf32>
    %c3_28 = arith.constant 3 : index
    %c0_29 = arith.constant 0 : index
    %c0_30 = arith.constant 0 : index
    %c0_31 = arith.constant 0 : index
    %29 = vector.load %arg1[%c3_28, %c0_29, %c0_30, %c0_31] : memref<4x9x9x8xf32, #tpu.memory_space<vmem>>, vector<1x8x8x8xf32>
    %30 = vector.shape_cast %29 : vector<1x8x8x8xf32> to vector<8x8x8xf32>
    %31 = vector.shape_cast %30 : vector<8x8x8xf32> to vector<64x8xf32>
    %c4 = arith.constant 4 : index
    %c0_32 = arith.constant 0 : index
    %c0_33 = arith.constant 0 : index
    %32 = vector.load %arg2[%c4, %c0_32, %c0_33] : memref<9x8x8xf32, #tpu.memory_space<vmem>>, vector<1x8x8xf32>
    %33 = vector.shape_cast %32 : vector<1x8x8xf32> to vector<8x8xf32>
    %cst_34 = arith.constant dense<0.000000e+00> : vector<64x8xf32>
    %34 = tpu.matmul %31, %33, %cst_34 {dimension_numbers = #tpu.dot_dimension_numbers<[1], [0], [0], [1], [0, 0, 1, 1], [], []>} : vector<64x8xf32>, vector<8x8xf32>, vector<64x8xf32> -> vector<64x8xf32>
    %35 = arith.addf %28, %34 : vector<64x8xf32>
    %c2_35 = arith.constant 2 : index
    %c0_36 = arith.constant 0 : index
    %c1_37 = arith.constant 1 : index
    %c0_38 = arith.constant 0 : index
    %36 = vector.load %arg1[%c2_35, %c0_36, %c1_37, %c0_38] : memref<4x9x9x8xf32, #tpu.memory_space<vmem>>, vector<1x8x8x8xf32>
    %37 = vector.shape_cast %36 : vector<1x8x8x8xf32> to vector<8x8x8xf32>
    %38 = vector.shape_cast %37 : vector<8x8x8xf32> to vector<64x8xf32>
    %c5 = arith.constant 5 : index
    %c0_39 = arith.constant 0 : index
    %c0_40 = arith.constant 0 : index
    %39 = vector.load %arg2[%c5, %c0_39, %c0_40] : memref<9x8x8xf32, #tpu.memory_space<vmem>>, vector<1x8x8xf32>
    %40 = vector.shape_cast %39 : vector<1x8x8xf32> to vector<8x8xf32>
    %cst_41 = arith.constant dense<0.000000e+00> : vector<64x8xf32>
    %41 = tpu.matmul %38, %40, %cst_41 {dimension_numbers = #tpu.dot_dimension_numbers<[1], [0], [0], [1], [0, 0, 1, 1], [], []>} : vector<64x8xf32>, vector<8x8xf32>, vector<64x8xf32> -> vector<64x8xf32>
    %42 = arith.addf %35, %41 : vector<64x8xf32>
    %c0_42 = arith.constant 0 : index
    %c1_43 = arith.constant 1 : index
    %c0_44 = arith.constant 0 : index
    %c0_45 = arith.constant 0 : index
    %43 = vector.load %arg1[%c0_42, %c1_43, %c0_44, %c0_45] : memref<4x9x9x8xf32, #tpu.memory_space<vmem>>, vector<1x8x8x8xf32>
    %44 = vector.shape_cast %43 : vector<1x8x8x8xf32> to vector<8x8x8xf32>
    %45 = vector.shape_cast %44 : vector<8x8x8xf32> to vector<64x8xf32>
    %c6 = arith.constant 6 : index
    %c0_46 = arith.constant 0 : index
    %c0_47 = arith.constant 0 : index
    %46 = vector.load %arg2[%c6, %c0_46, %c0_47] : memref<9x8x8xf32, #tpu.memory_space<vmem>>, vector<1x8x8xf32>
    %47 = vector.shape_cast %46 : vector<1x8x8xf32> to vector<8x8xf32>
    %cst_48 = arith.constant dense<0.000000e+00> : vector<64x8xf32>
    %48 = tpu.matmul %45, %47, %cst_48 {dimension_numbers = #tpu.dot_dimension_numbers<[1], [0], [0], [1], [0, 0, 1, 1], [], []>} : vector<64x8xf32>, vector<8x8xf32>, vector<64x8xf32> -> vector<64x8xf32>
    %49 = arith.addf %42, %48 : vector<64x8xf32>
    %c1_49 = arith.constant 1 : index
    %c1_50 = arith.constant 1 : index
    %c0_51 = arith.constant 0 : index
    %c0_52 = arith.constant 0 : index
    %50 = vector.load %arg1[%c1_49, %c1_50, %c0_51, %c0_52] : memref<4x9x9x8xf32, #tpu.memory_space<vmem>>, vector<1x8x8x8xf32>
    %51 = vector.shape_cast %50 : vector<1x8x8x8xf32> to vector<8x8x8xf32>
    %52 = vector.shape_cast %51 : vector<8x8x8xf32> to vector<64x8xf32>
    %c7 = arith.constant 7 : index
    %c0_53 = arith.constant 0 : index
    %c0_54 = arith.constant 0 : index
    %53 = vector.load %arg2[%c7, %c0_53, %c0_54] : memref<9x8x8xf32, #tpu.memory_space<vmem>>, vector<1x8x8xf32>
    %54 = vector.shape_cast %53 : vector<1x8x8xf32> to vector<8x8xf32>
    %cst_55 = arith.constant dense<0.000000e+00> : vector<64x8xf32>
    %55 = tpu.matmul %52, %54, %cst_55 {dimension_numbers = #tpu.dot_dimension_numbers<[1], [0], [0], [1], [0, 0, 1, 1], [], []>} : vector<64x8xf32>, vector<8x8xf32>, vector<64x8xf32> -> vector<64x8xf32>
    %56 = arith.addf %49, %55 : vector<64x8xf32>
    %c0_56 = arith.constant 0 : index
    %c1_57 = arith.constant 1 : index
    %c1_58 = arith.constant 1 : index
    %c0_59 = arith.constant 0 : index
    %57 = vector.load %arg1[%c0_56, %c1_57, %c1_58, %c0_59] : memref<4x9x9x8xf32, #tpu.memory_space<vmem>>, vector<1x8x8x8xf32>
    %58 = vector.shape_cast %57 : vector<1x8x8x8xf32> to vector<8x8x8xf32>
    %59 = vector.shape_cast %58 : vector<8x8x8xf32> to vector<64x8xf32>
    %c8 = arith.constant 8 : index
    %c0_60 = arith.constant 0 : index
    %c0_61 = arith.constant 0 : index
    %60 = vector.load %arg2[%c8, %c0_60, %c0_61] : memref<9x8x8xf32, #tpu.memory_space<vmem>>, vector<1x8x8xf32>
    %61 = vector.shape_cast %60 : vector<1x8x8xf32> to vector<8x8xf32>
    %cst_62 = arith.constant dense<0.000000e+00> : vector<64x8xf32>
    %62 = tpu.matmul %59, %61, %cst_62 {dimension_numbers = #tpu.dot_dimension_numbers<[1], [0], [0], [1], [0, 0, 1, 1], [], []>} : vector<64x8xf32>, vector<8x8xf32>, vector<64x8xf32> -> vector<64x8xf32>
    %63 = arith.addf %56, %62 : vector<64x8xf32>
    %c0_63 = arith.constant 0 : index
    %c0_64 = arith.constant 0 : index
    %64 = vector.load %arg5[%c0_63, %c0_64] : memref<1x8xf32, #tpu.memory_space<vmem>>, vector<1x8xf32>
    %65 = vector.broadcast %64 : vector<1x8xf32> to vector<64x8xf32>
    %66 = arith.mulf %63, %65 : vector<64x8xf32>
    %c0_65 = arith.constant 0 : index
    %c0_66 = arith.constant 0 : index
    %67 = vector.load %arg6[%c0_65, %c0_66] : memref<1x8xf32, #tpu.memory_space<vmem>>, vector<1x8xf32>
    %68 = vector.broadcast %67 : vector<1x8xf32> to vector<64x8xf32>
    %69 = arith.addf %66, %68 : vector<64x8xf32>
    %cst_67 = arith.constant 0.000000e+00 : f32
    %70 = vector.broadcast %cst_67 : f32 to vector<64x8xf32>
    %71 = arith.maximumf %69, %70 : vector<64x8xf32>
    %cst_68 = arith.constant 0.000000e+00 : f32
    %72 = vector.broadcast %cst_68 : f32 to vector<10x10x8xf32>
    %c0_69 = arith.constant 0 : index
    %c0_70 = arith.constant 0 : index
    %c0_71 = arith.constant 0 : index
    %73 = vector.load %arg8[%c0_69, %c0_70, %c0_71] : memref<10x10x8xf32, #tpu.memory_space<vmem>>, vector<10x10x8xf32>
    tpu.vector_store %arg8[%c0_69, %c0_70, %c0_71], %72 {strides = array<i32>} : memref<10x10x8xf32, #tpu.memory_space<vmem>>, vector<10x10x8xf32>,
    %74 = vector.shape_cast %71 : vector<64x8xf32> to vector<8x8x8xf32>
    %c1_72 = arith.constant 1 : index
    %c1_73 = arith.constant 1 : index
    %c0_74 = arith.constant 0 : index
    %75 = vector.load %arg8[%c1_72, %c1_73, %c0_74] : memref<10x10x8xf32, #tpu.memory_space<vmem>>, vector<8x8x8xf32>
    tpu.vector_store %arg8[%c1_72, %c1_73, %c0_74], %74 {strides = array<i32>} : memref<10x10x8xf32, #tpu.memory_space<vmem>>, vector<8x8x8xf32>,
    %cst_75 = arith.constant 0.000000e+00 : f32
    %76 = vector.broadcast %cst_75 : f32 to vector<64x8xf32>
    %c0_76 = arith.constant 0 : index
    %c0_77 = arith.constant 0 : index
    %c0_78 = arith.constant 0 : index
    %77 = vector.load %arg8[%c0_76, %c0_77, %c0_78] : memref<10x10x8xf32, #tpu.memory_space<vmem>>, vector<8x8x8xf32>
    %78 = vector.shape_cast %77 : vector<8x8x8xf32> to vector<64x8xf32>
    %c0_79 = arith.constant 0 : index
    %c0_80 = arith.constant 0 : index
    %c0_81 = arith.constant 0 : index
    %79 = vector.load %arg3[%c0_79, %c0_80, %c0_81] : memref<9x8x8xf32, #tpu.memory_space<vmem>>, vector<1x8x8xf32>
    %80 = vector.shape_cast %79 : vector<1x8x8xf32> to vector<8x8xf32>
    %cst_82 = arith.constant dense<0.000000e+00> : vector<64x8xf32>
    %81 = tpu.matmul %78, %80, %cst_82 {dimension_numbers = #tpu.dot_dimension_numbers<[1], [0], [0], [1], [0, 0, 1, 1], [], []>} : vector<64x8xf32>, vector<8x8xf32>, vector<64x8xf32> -> vector<64x8xf32>
    %82 = arith.addf %76, %81 : vector<64x8xf32>
    %c0_83 = arith.constant 0 : index
    %c1_84 = arith.constant 1 : index
    %c0_85 = arith.constant 0 : index
    %83 = vector.load %arg8[%c0_83, %c1_84, %c0_85] : memref<10x10x8xf32, #tpu.memory_space<vmem>>, vector<8x8x8xf32>
    %84 = vector.shape_cast %83 : vector<8x8x8xf32> to vector<64x8xf32>
    %c1_86 = arith.constant 1 : index
    %c0_87 = arith.constant 0 : index
    %c0_88 = arith.constant 0 : index
    %85 = vector.load %arg3[%c1_86, %c0_87, %c0_88] : memref<9x8x8xf32, #tpu.memory_space<vmem>>, vector<1x8x8xf32>
    %86 = vector.shape_cast %85 : vector<1x8x8xf32> to vector<8x8xf32>
    %cst_89 = arith.constant dense<0.000000e+00> : vector<64x8xf32>
    %87 = tpu.matmul %84, %86, %cst_89 {dimension_numbers = #tpu.dot_dimension_numbers<[1], [0], [0], [1], [0, 0, 1, 1], [], []>} : vector<64x8xf32>, vector<8x8xf32>, vector<64x8xf32> -> vector<64x8xf32>
    %88 = arith.addf %82, %87 : vector<64x8xf32>
    %c0_90 = arith.constant 0 : index
    %c2_91 = arith.constant 2 : index
    %c0_92 = arith.constant 0 : index
    %89 = vector.load %arg8[%c0_90, %c2_91, %c0_92] : memref<10x10x8xf32, #tpu.memory_space<vmem>>, vector<8x8x8xf32>
    %90 = vector.shape_cast %89 : vector<8x8x8xf32> to vector<64x8xf32>
    %c2_93 = arith.constant 2 : index
    %c0_94 = arith.constant 0 : index
    %c0_95 = arith.constant 0 : index
    %91 = vector.load %arg3[%c2_93, %c0_94, %c0_95] : memref<9x8x8xf32, #tpu.memory_space<vmem>>, vector<1x8x8xf32>
    %92 = vector.shape_cast %91 : vector<1x8x8xf32> to vector<8x8xf32>
    %cst_96 = arith.constant dense<0.000000e+00> : vector<64x8xf32>
    %93 = tpu.matmul %90, %92, %cst_96 {dimension_numbers = #tpu.dot_dimension_numbers<[1], [0], [0], [1], [0, 0, 1, 1], [], []>} : vector<64x8xf32>, vector<8x8xf32>, vector<64x8xf32> -> vector<64x8xf32>
    %94 = arith.addf %88, %93 : vector<64x8xf32>
    %c1_97 = arith.constant 1 : index
    %c0_98 = arith.constant 0 : index
    %c0_99 = arith.constant 0 : index
    %95 = vector.load %arg8[%c1_97, %c0_98, %c0_99] : memref<10x10x8xf32, #tpu.memory_space<vmem>>, vector<8x8x8xf32>
    %96 = vector.shape_cast %95 : vector<8x8x8xf32> to vector<64x8xf32>
    %c3_100 = arith.constant 3 : index
    %c0_101 = arith.constant 0 : index
    %c0_102 = arith.constant 0 : index
    %97 = vector.load %arg3[%c3_100, %c0_101, %c0_102] : memref<9x8x8xf32, #tpu.memory_space<vmem>>, vector<1x8x8xf32>
    %98 = vector.shape_cast %97 : vector<1x8x8xf32> to vector<8x8xf32>
    %cst_103 = arith.constant dense<0.000000e+00> : vector<64x8xf32>
    %99 = tpu.matmul %96, %98, %cst_103 {dimension_numbers = #tpu.dot_dimension_numbers<[1], [0], [0], [1], [0, 0, 1, 1], [], []>} : vector<64x8xf32>, vector<8x8xf32>, vector<64x8xf32> -> vector<64x8xf32>
    %100 = arith.addf %94, %99 : vector<64x8xf32>
    %c1_104 = arith.constant 1 : index
    %c1_105 = arith.constant 1 : index
    %c0_106 = arith.constant 0 : index
    %101 = vector.load %arg8[%c1_104, %c1_105, %c0_106] : memref<10x10x8xf32, #tpu.memory_space<vmem>>, vector<8x8x8xf32>
    %102 = vector.shape_cast %101 : vector<8x8x8xf32> to vector<64x8xf32>
    %c4_107 = arith.constant 4 : index
    %c0_108 = arith.constant 0 : index
    %c0_109 = arith.constant 0 : index
    %103 = vector.load %arg3[%c4_107, %c0_108, %c0_109] : memref<9x8x8xf32, #tpu.memory_space<vmem>>, vector<1x8x8xf32>
    %104 = vector.shape_cast %103 : vector<1x8x8xf32> to vector<8x8xf32>
    %cst_110 = arith.constant dense<0.000000e+00> : vector<64x8xf32>
    %105 = tpu.matmul %102, %104, %cst_110 {dimension_numbers = #tpu.dot_dimension_numbers<[1], [0], [0], [1], [0, 0, 1, 1], [], []>} : vector<64x8xf32>, vector<8x8xf32>, vector<64x8xf32> -> vector<64x8xf32>
    %106 = arith.addf %100, %105 : vector<64x8xf32>
    %c1_111 = arith.constant 1 : index
    %c2_112 = arith.constant 2 : index
    %c0_113 = arith.constant 0 : index
    %107 = vector.load %arg8[%c1_111, %c2_112, %c0_113] : memref<10x10x8xf32, #tpu.memory_space<vmem>>, vector<8x8x8xf32>
    %108 = vector.shape_cast %107 : vector<8x8x8xf32> to vector<64x8xf32>
    %c5_114 = arith.constant 5 : index
    %c0_115 = arith.constant 0 : index
    %c0_116 = arith.constant 0 : index
    %109 = vector.load %arg3[%c5_114, %c0_115, %c0_116] : memref<9x8x8xf32, #tpu.memory_space<vmem>>, vector<1x8x8xf32>
    %110 = vector.shape_cast %109 : vector<1x8x8xf32> to vector<8x8xf32>
    %cst_117 = arith.constant dense<0.000000e+00> : vector<64x8xf32>
    %111 = tpu.matmul %108, %110, %cst_117 {dimension_numbers = #tpu.dot_dimension_numbers<[1], [0], [0], [1], [0, 0, 1, 1], [], []>} : vector<64x8xf32>, vector<8x8xf32>, vector<64x8xf32> -> vector<64x8xf32>
    %112 = arith.addf %106, %111 : vector<64x8xf32>
    %c2_118 = arith.constant 2 : index
    %c0_119 = arith.constant 0 : index
    %c0_120 = arith.constant 0 : index
    %113 = vector.load %arg8[%c2_118, %c0_119, %c0_120] : memref<10x10x8xf32, #tpu.memory_space<vmem>>, vector<8x8x8xf32>
    %114 = vector.shape_cast %113 : vector<8x8x8xf32> to vector<64x8xf32>
    %c6_121 = arith.constant 6 : index
    %c0_122 = arith.constant 0 : index
    %c0_123 = arith.constant 0 : index
    %115 = vector.load %arg3[%c6_121, %c0_122, %c0_123] : memref<9x8x8xf32, #tpu.memory_space<vmem>>, vector<1x8x8xf32>
    %116 = vector.shape_cast %115 : vector<1x8x8xf32> to vector<8x8xf32>
    %cst_124 = arith.constant dense<0.000000e+00> : vector<64x8xf32>
    %117 = tpu.matmul %114, %116, %cst_124 {dimension_numbers = #tpu.dot_dimension_numbers<[1], [0], [0], [1], [0, 0, 1, 1], [], []>} : vector<64x8xf32>, vector<8x8xf32>, vector<64x8xf32> -> vector<64x8xf32>
    %118 = arith.addf %112, %117 : vector<64x8xf32>
    %c2_125 = arith.constant 2 : index
    %c1_126 = arith.constant 1 : index
    %c0_127 = arith.constant 0 : index
    %119 = vector.load %arg8[%c2_125, %c1_126, %c0_127] : memref<10x10x8xf32, #tpu.memory_space<vmem>>, vector<8x8x8xf32>
    %120 = vector.shape_cast %119 : vector<8x8x8xf32> to vector<64x8xf32>
    %c7_128 = arith.constant 7 : index
    %c0_129 = arith.constant 0 : index
    %c0_130 = arith.constant 0 : index
    %121 = vector.load %arg3[%c7_128, %c0_129, %c0_130] : memref<9x8x8xf32, #tpu.memory_space<vmem>>, vector<1x8x8xf32>
    %122 = vector.shape_cast %121 : vector<1x8x8xf32> to vector<8x8xf32>
    %cst_131 = arith.constant dense<0.000000e+00> : vector<64x8xf32>
    %123 = tpu.matmul %120, %122, %cst_131 {dimension_numbers = #tpu.dot_dimension_numbers<[1], [0], [0], [1], [0, 0, 1, 1], [], []>} : vector<64x8xf32>, vector<8x8xf32>, vector<64x8xf32> -> vector<64x8xf32>
    %124 = arith.addf %118, %123 : vector<64x8xf32>
    %c2_132 = arith.constant 2 : index
    %c2_133 = arith.constant 2 : index
    %c0_134 = arith.constant 0 : index
    %125 = vector.load %arg8[%c2_132, %c2_133, %c0_134] : memref<10x10x8xf32, #tpu.memory_space<vmem>>, vector<8x8x8xf32>
    %126 = vector.shape_cast %125 : vector<8x8x8xf32> to vector<64x8xf32>
    %c8_135 = arith.constant 8 : index
    %c0_136 = arith.constant 0 : index
    %c0_137 = arith.constant 0 : index
    %127 = vector.load %arg3[%c8_135, %c0_136, %c0_137] : memref<9x8x8xf32, #tpu.memory_space<vmem>>, vector<1x8x8xf32>
    %128 = vector.shape_cast %127 : vector<1x8x8xf32> to vector<8x8xf32>
    %cst_138 = arith.constant dense<0.000000e+00> : vector<64x8xf32>
    %129 = tpu.matmul %126, %128, %cst_138 {dimension_numbers = #tpu.dot_dimension_numbers<[1], [0], [0], [1], [0, 0, 1, 1], [], []>} : vector<64x8xf32>, vector<8x8xf32>, vector<64x8xf32> -> vector<64x8xf32>
    %130 = arith.addf %124, %129 : vector<64x8xf32>
    %c3_139 = arith.constant 3 : index
    %c0_140 = arith.constant 0 : index
    %c0_141 = arith.constant 0 : index
    %c0_142 = arith.constant 0 : index
    %131 = vector.load %arg1[%c3_139, %c0_140, %c0_141, %c0_142] : memref<4x9x9x8xf32, #tpu.memory_space<vmem>>, vector<1x8x8x8xf32>
    %132 = vector.shape_cast %131 : vector<1x8x8x8xf32> to vector<8x8x8xf32>
    %133 = vector.shape_cast %132 : vector<8x8x8xf32> to vector<64x8xf32>
    %c0_143 = arith.constant 0 : index
    %c0_144 = arith.constant 0 : index
    %134 = vector.load %arg4[%c0_143, %c0_144] : memref<8x8xf32, #tpu.memory_space<vmem>>, vector<8x8xf32>
    %cst_145 = arith.constant dense<0.000000e+00> : vector<64x8xf32>
    %135 = tpu.matmul %133, %134, %cst_145 {dimension_numbers = #tpu.dot_dimension_numbers<[1], [0], [0], [1], [0, 0, 1, 1], [], []>} : vector<64x8xf32>, vector<8x8xf32>, vector<64x8xf32> -> vector<64x8xf32>
    %136 = arith.addf %130, %135 : vector<64x8xf32>
    %137 = vector.shape_cast %136 : vector<64x8xf32> to vector<8x8x8xf32>
    %c0_146 = arith.constant 0 : index
    %c0_147 = arith.constant 0 : index
    %c0_148 = arith.constant 0 : index
    %c0_149 = arith.constant 0 : index
    %138 = vector.load %arg7[%c0_146, %c0_147, %c0_148, %c0_149] : memref<1x8x8x8xf32, #tpu.memory_space<vmem>>, vector<1x8x8x8xf32>
    %139 = vector.shape_cast %138 : vector<1x8x8x8xf32> to vector<8x8x8xf32>
    %140 = vector.shape_cast %137 : vector<8x8x8xf32> to vector<1x8x8x8xf32>
    tpu.vector_store %arg7[%c0_146, %c0_147, %c0_148, %c0_149], %140 {strides = array<i32>} : memref<1x8x8x8xf32, #tpu.memory_space<vmem>>, vector<1x8x8x8xf32>,
    return
  }
  func.func @transform_0(%arg0: i32) -> (i32, i32, i32, i32) {
    %c0_i32 = arith.constant 0 : i32
    %c0_i32_0 = arith.constant 0 : i32
    %c0_i32_1 = arith.constant 0 : i32
    %c0_i32_2 = arith.constant 0 : i32
    return %arg0, %c0_i32, %c0_i32_0, %c0_i32_1 : i32, i32, i32, i32
  }
  func.func @transform_1(%arg0: i32) -> (i32, i32, i32) {
    %c0_i32 = arith.constant 0 : i32
    %c0_i32_0 = arith.constant 0 : i32
    %c0_i32_1 = arith.constant 0 : i32
    %c0_i32_2 = arith.constant 0 : i32
    return %c0_i32, %c0_i32_0, %c0_i32_1 : i32, i32, i32
  }
  func.func @transform_2(%arg0: i32) -> (i32, i32, i32) {
    %c0_i32 = arith.constant 0 : i32
    %c0_i32_0 = arith.constant 0 : i32
    %c0_i32_1 = arith.constant 0 : i32
    %c0_i32_2 = arith.constant 0 : i32
    return %c0_i32, %c0_i32_0, %c0_i32_1 : i32, i32, i32
  }
  func.func @transform_3(%arg0: i32) -> (i32, i32) {
    %c0_i32 = arith.constant 0 : i32
    %c0_i32_0 = arith.constant 0 : i32
    %c0_i32_1 = arith.constant 0 : i32
    return %c0_i32, %c0_i32_0 : i32, i32
  }
  func.func @transform_4(%arg0: i32) -> (i32, i32) {
    %c0_i32 = arith.constant 0 : i32
    %c0_i32_0 = arith.constant 0 : i32
    %c0_i32_1 = arith.constant 0 : i32
    return %c0_i32, %c0_i32_0 : i32, i32
  }
  func.func @transform_5(%arg0: i32) -> (i32, i32) {
    %c0_i32 = arith.constant 0 : i32
    %c0_i32_0 = arith.constant 0 : i32
    %c0_i32_1 = arith.constant 0 : i32
    return %c0_i32, %c0_i32_0 : i32, i32
  }
  func.func @transform_6(%arg0: i32) -> (i32, i32, i32, i32) {
    %c0_i32 = arith.constant 0 : i32
    %c0_i32_0 = arith.constant 0 : i32
    %c0_i32_1 = arith.constant 0 : i32
    %c0_i32_2 = arith.constant 0 : i32
    return %arg0, %c0_i32, %c0_i32_0, %c0_i32_1 : i32, i32, i32, i32
  }
}

</mosaic_0001>

<bundles_post_ra>
// kernel: tpu_custom_call.1
= control target key start
LH: loop header
LB: loop body
LE: loop exit
PB: predicated region body
PF: predicated region fallthrough
CT: control target
= control target key end

     0   :  { %11 = vsyncpa [#allocation4], 0  ;;  %s4756_s0 = inlined_call_operand.vmem [shape: f32[8,9,9,8], index: 0, kind: input, shape index: {}]   ;;  %s4757_s1 = inlined_call_operand.vmem [shape: f32[9,8,8], index: 1, kind: input, shape index: {}]   ;;  %s4758_s2 = inlined_call_operand.vmem [shape: f32[9,8,8], index: 2, kind: input, shape index: {}]   ;;  %s4759_s3 = inlined_call_operand.vmem [shape: f32[8,8], index: 3, kind: input, shape index: {}]   ;;  %s4760_s4 = inlined_call_operand.vmem [shape: f32[1,8], index: 4, kind: input, shape index: {}]   ;;  %s4761_s5 = inlined_call_operand.vmem [shape: f32[1,8], index: 5, kind: input, shape index: {}]   ;;  %s4762_s6 = inlined_call_operand.hbm [shape: f32[2,8,8,8], index: 6, kind: output, shape index: {}]  }
   0x1   :  { %13 = vsyncpa [#allocation4 + $0x1], 0  ;;  %s4140_s21 = smov 0   ;;  %s4142_s22 = smov 0  }
   0x2   :  { %s4144_s23 = smov 0   ;;  %s4146_s24 = smov 0  }
   0x3 LB: > { %s4161_s25 = sadd.s32 4294967295, %s4099_s24   ;;  %s3172_s26 = sadd.s32 4294967294, %s4099_s24   ;;  %s4099_s24 = sphi %s4146_s24, %s4768_s24   ;;  %s4095_s23 = sphi %s4144_s23, %s4767_s23   ;;  %s4091_s22 = sphi %s4142_s22, %s4766_s22   ;;  %s4087_s21 = sphi %s4140_s21, %s4765_s21  }
   0x4   : > { %s4165_s27 = sadd.s32 1, %s4099_s24   ;;  %s157_s28 = sadd.s32 1, %s4095_s23 }
   0x5   : > { %s154_s29 = ssub.s32 %s4099_s24, %s4165_s27  ;;  %p167_p0 = scmp.ne.s32.totalorder %s4095_s23, %s4091_s22 }
   0x6   : > { %p155_p1 = scmp.eq.s32.totalorder %s154_s29, 0  ;;  %p168_p2 = scmp.eq.s32.totalorder %s4161_s25, 1 }
   0x7   : > { %p173_p3 = scmp.ne.s32.totalorder %s4091_s22, %s4087_s21  ;;  %p174_p4 = scmp.eq.s32.totalorder %s3172_s26, 1 }
   0x8   : > { %s4176_s30 = scalar_select %p155_p1, %s4095_s23, %s157_s28  }
   0x9   : > { %p4178_p5 = por %p168_p2, %p167_p0  ;;  %p4182_p6 = por %p174_p4, %p173_p3 }
   0xa   : > { %p3175_p7 = scmp.ge.s32.totalorder %s4099_s24, 1  ;;  %p217_p8 = scmp.lt.s32.totalorder %s4099_s24, 3 }
   0xc   : > { %p218_p9 = pnand %p3175_p7, %p217_p8 }
   0xd   : > { %v3187_v0 = vld [vmem:[%s4757_s1 + $0x8] sm:$0xff] (!%p218_p9)  ;;  %s3177_s11 = sshll.u32 (!%p218_p9), %s4161_s25, 2  ;;  %v263_v1 = vld [vmem:[%s4757_s1] sm:$0xff] (!%p218_p9)  ;;  %vm275_vm0 = vcmask (!%p218_p9), 64512   ;;  %v3204_v5 = vld [vmem:[%s4757_s1 + $0x10] sm:$0xff] (!%p218_p9)  ;;  %vm1606_vm1 = vcmask (!%p218_p9), 58368  }
   0xe   : > { %221 = sbr.rel (%p218_p9) target bundleno = 766 (0x2fe), region = 44  ;;  %3590 = vmatprep.subr.mxu0 (!%p218_p9), %v3187_v0  ;;  %p249_p10 = scmp.lt.s32.totalorder (!%p218_p9), %s3177_s11, 7  ;;  %v3221_v14 = vld [vmem:[%s4757_s1 + $0x18] sm:$0xff] (!%p218_p9)  ;;  %v3238_v23 = vld [vmem:[%s4757_s1 + $0x20] sm:$0xff] (!%p218_p9)  ;;  %v3255_v32 = vld [vmem:[%s4757_s1 + $0x28] sm:$0xff] (!%p218_p9)  ;;  %v4101_v60 = vmov (!%p218_p9), 0.0  }
   0xf   : > { %3591 = vmatpush3.msra.mxu0 (!%p218_p9), %v3187_v0  ;;  %v3272_v41 = vld [vmem:[%s4757_s1 + $0x30] sm:$0xff] (!%p218_p9)  ;;  %v3289_v50 = vld [vmem:[%s4757_s1 + $0x38] sm:$0xff] (!%p218_p9)  ;;  %v3306_v56 = vld [vmem:[%s4757_s1 + $0x40] sm:$0xff] (!%p218_p9)  ;;  %1610 = vst.msk [vmem:[#allocation2 + $0x20] sm:$0xff] (!%p218_p9), %vm275_vm0, %v4101_v60  ;;  %s4102_s20 = smov (!%p218_p9), [#allocation3]  }
  0x10   : > { %3604 = vmatprep.subr.mxu0 (!%p218_p9), %v263_v1  ;;  %1611 = vst.msk [vmem:[#allocation2 + $0x28] sm:$0x3] (!%p218_p9), %vm1606_vm1, %v4101_v60  ;;  %1607 = vst.msk [vmem:[#allocation2 + $0x8] sm:$0x3] (!%p218_p9), %vm1606_vm1, %v4101_v60  ;;  %v3317_v61 = vld [vmem:[%s4758_s2 + $0x8] sm:$0xff] (!%p218_p9)  ;;  %v1643_v63 = vld [vmem:[%s4758_s2] sm:$0xff] (!%p218_p9) }
  0x11   : > { %1605 = vst.msk [vmem:[#allocation2] sm:$0xff] (!%p218_p9), %vm275_vm0, %v4101_v60  ;;  %1608 = vst.msk [vmem:[#allocation2 + $0x10] sm:$0xff] (!%p218_p9), %vm275_vm0, %v4101_v60  ;;  %3856 = vmatprep.subr.mxu1 (!%p218_p9), %v3317_v61  ;;  %v3315_v0 = vld [vmem:[%s4760_s4] ss:$0 sm:$0xff] (!%p218_p9)  ;;  %s4041_s26 = sshll.u32 (!%p218_p9), %s4102_s20, 4  ;;  %s4042_s26 = int_to_ptr.vmem [resolvable:$false] %s4041_s26 }
  0x12   : > { %1609 = vst.msk [vmem:[#allocation2 + $0x18] sm:$0x3] (!%p218_p9), %vm1606_vm1, %v4101_v60  ;;  %1613 = vst.msk [vmem:[#allocation2 + $0x38] sm:$0x3] (!%p218_p9), %vm1606_vm1, %v4101_v60  ;;  %3857 = vmatpush3.msra.mxu1 (!%p218_p9), %v3317_v61  ;;  %s4043_s28 = scalar_lea.vmem (!%p218_p9), %s4042_s26, 2048 }
  0x13   : > { %1612 = vst.msk [vmem:[#allocation2 + $0x30] sm:$0xff] (!%p218_p9), %vm275_vm0, %v4101_v60  ;;  %1614 = vst.msk [vmem:[#allocation2 + $0x40] sm:$0xff] (!%p218_p9), %vm275_vm0, %v4101_v60  ;;  %3730 = vmatprep.subr.mxu1 (!%p218_p9), %v1643_v63 }
  0x14   : > { %1615 = vst.msk [vmem:[#allocation2 + $0x48] sm:$0x3] (!%p218_p9), %vm1606_vm1, %v4101_v60  ;;  %1617 = vst.msk [vmem:[#allocation2 + $0x58] sm:$0x3] (!%p218_p9), %vm1606_vm1, %v4101_v60 }
  0x15   : > { %s4770_s11 = smov (!%p249_p10, %s3177_s11), 7  ;;  %1616 = vst.msk [vmem:[#allocation2 + $0x50] sm:$0xff] %vm275_vm0, %v4101_v60  ;;  %1618 = vst.msk [vmem:[#allocation2 + $0x60] sm:$0xff] %vm275_vm0, %v4101_v60 }
  0x16   : > { %s3994_s14 = smul.u32 144, %s4770_s11  ;;  %1619 = vst.msk [vmem:[#allocation2 + $0x68] sm:$0x3] %vm1606_vm1, %v4101_v60  ;;  %1621 = vst.msk [vmem:[#allocation2 + $0x78] sm:$0x3] %vm1606_vm1, %v4101_v60  ;;  %s245_s11 = sand.u32 1, %s4091_s22  }
  0x17   : > { %1620 = vst.msk [vmem:[#allocation2 + $0x70] sm:$0xff] %vm275_vm0, %v4101_v60  ;;  %1622 = vst.msk [vmem:[#allocation2 + $0x80] sm:$0xff] %vm275_vm0, %v4101_v60  ;;  %s3176_s12 = sshll.u32 %s245_s11, 6 }
  0x18   : > { %s4198_s17 = scalar_lea.vmem %s4756_s0, %s3994_s14  ;;  %1623 = vst.msk [vmem:[#allocation2 + $0x88] sm:$0x3] %vm1606_vm1, %v4101_v60  ;;  %1625 = vst.msk [vmem:[#allocation2 + $0x98] sm:$0x3] %vm1606_vm1, %v4101_v60  ;;  %v1644_v62 = vld [vmem:[#allocation2 + $0x1] sm:$0xff]  ;;  %s247_s13 = scalar_lea.vmem [#allocation3], %s3176_s12 }
  0x19   : > { %v3179_v2 = vld [vmem:[%s4198_s17 + $0x90] sm:$0xff]  ;;  %v4202_v3 = vld [vmem:[%s4198_s17 + $0xa0] sm:$0xff]  ;;  %1624 = vst.msk [vmem:[#allocation2 + $0x90] sm:$0xff] %vm275_vm0, %v4101_v60  ;;  %s3418_s14 = sshll.u32 %s4161_s25, 10  ;;  %s3110_s15 = sshll.u32 %s247_s13, 4  ;;  %s4711_s15 = int_to_ptr.vmem [resolvable:$true] %s3110_s15 }
  0x1a   : > { %v4205_v4 = vld [vmem:[%s4198_s17 + $0xb0] sm:$0xff]  ;;  %3592 = vmatprep.mubr.msk.f32.mxu0 %vm275_vm0, %v3179_v2  ;;  %v4216_v6 = vld [vmem:[%s4198_s17 + $0xc0] sm:$0xff]  ;;  %s4709_s18 = scalar_lea.hbm %s4762_s6, %s3418_s14  ;;  %s4715_s25 = scalar_lea.sflag [#allocation4], %s245_s11 }
  0x1b   : > { %3593 = vmatmul.mubr.msk.f32.vlgmr.msra.gmra.mrb[0].mxu0 %vm275_vm0, %v4202_v3  ;;  %v4219_v7 = vld [vmem:[%s4198_s17 + $0xd0] sm:$0xff]  ;;  %v4226_v8 = vld [vmem:[%s4198_s17 + $0xe0] sm:$0xff]  ;;  %s4037_s19 = scalar_lea.vmem %s4711_s15, 1024  ;;  %p4044_p0 = scmp.lt.s32.totalorder %s4711_s15, %s4042_s26 }
  0x1c   : > { %3605 = vmatpush3.msra.mxu0 %v263_v1  ;;  %3595 = vmatprep.mubr.msk.f32.mxu0 %vm275_vm0, %v4205_v4  ;;  %v4229_v9 = vld [vmem:[%s4198_s17 + $0xf0] sm:$0xff]  ;;  %v4236_v10 = vld [vmem:[%s4198_s17 + $0x100] sm:$0xff]  ;;  %p4038_p11 = scmp.ne.s32.totalorder %s4711_s15, %s4037_s19  ;;  %p4045_p1 = scmp.lt.s32.totalorder %s4043_s28, %s4037_s19 }
  0x1d   : > { %3618 = vmatprep.subr.mxu0 %v3204_v5  ;;  %v255_v11 = vld [vmem:[%s4198_s17] sm:$0xff]  ;;  %v4243_v12 = vld [vmem:[%s4198_s17 + $0x10] sm:$0xff] }
  0x1e   : > { %v4246_v13 = vld [vmem:[%s4198_s17 + $0x20] sm:$0xff]  ;;  %v4256_v15 = vld [vmem:[%s4198_s17 + $0x30] sm:$0xff]  ;;  %p4039_p12 = pnand %p4038_p11, %p4178_p5  ;;  %p4046_p2 = por %p4045_p1, %p4044_p0 }
  0x1f   : > { %3596 = vmatmul.mubr.msk.f32.gmra.mrb[2].mxu0 %vm275_vm0, %v4216_v6  ;;  %v4259_v16 = vld [vmem:[%s4198_s17 + $0x40] sm:$0xff]  ;;  %v4266_v17 = vld [vmem:[%s4198_s17 + $0x50] sm:$0xff] }
  0x20   : > { %3598 = vmatprep.mubr.msk.f32.mxu0 %vm275_vm0, %v4219_v7  ;;  %v4269_v18 = vld [vmem:[%s4198_s17 + $0x60] sm:$0xff]  ;;  %v4276_v19 = vld [vmem:[%s4198_s17 + $0x70] sm:$0xff]  ;;  %p4040_p13 = pneg %p4039_p12 }
  0x21   : > { %v534_v20 = vld [vmem:[%s4198_s17 + $0x1] sm:$0xff]  ;;  %v4283_v21 = vld [vmem:[%s4198_s17 + $0x11] sm:$0xff]  ;;  %v3316_v2 = vld [vmem:[%s4761_s5] ss:$0 sm:$0xff] }
  0x22   : > { %v4286_v22 = vld [vmem:[%s4198_s17 + $0x21] sm:$0xff]  ;;  %v4296_v24 = vld [vmem:[%s4198_s17 + $0x31] sm:$0xff]  ;;  %p4047_p3 = pnand %p4046_p2, %p4040_p13 }
  0x23   : > { %3599 = vmatmul.mubr.msk.f32.gmra.mrb[4].mxu0 %vm275_vm0, %v4226_v8  ;;  %v4299_v25 = vld [vmem:[%s4198_s17 + $0x41] sm:$0xff]  ;;  %v4306_v26 = vld [vmem:[%s4198_s17 + $0x51] sm:$0xff] }
  0x24   : > { %3601 = vmatprep.mubr.msk.f32.mxu0 %vm275_vm0, %v4229_v9  ;;  %v4309_v27 = vld [vmem:[%s4198_s17 + $0x61] sm:$0xff]  ;;  %v4316_v28 = vld [vmem:[%s4198_s17 + $0x71] sm:$0xff] }
  0x25   : > { %v3213_v29 = vld [vmem:[%s4198_s17 + $0x120] sm:$0xff]  ;;  %v3214_v30 = vld [vmem:[%s4198_s17 + $0x130] sm:$0xff] }
  0x26   : > { %v3215_v31 = vld [vmem:[%s4198_s17 + $0x140] sm:$0xff]  ;;  %v3216_v33 = vld [vmem:[%s4198_s17 + $0x150] sm:$0xff] }
  0x27   : > { %3602 = vmatmul.mubr.msk.f32.gmra.mrb[6].mxu0 %vm275_vm0, %v4236_v10  ;;  %v3217_v34 = vld [vmem:[%s4198_s17 + $0x160] sm:$0xff]  ;;  %v3218_v35 = vld [vmem:[%s4198_s17 + $0x170] sm:$0xff] }
  0x28   : > { %3606 = vmatprep.mubr.msk.f32.mxu0 %vm275_vm0, %v255_v11  ;;  %v3219_v36 = vld [vmem:[%s4198_s17 + $0x180] sm:$0xff]  ;;  %v3220_v37 = vld [vmem:[%s4198_s17 + $0x190] sm:$0xff] }
  0x29   : > { %v4339_v38 = vld [vmem:[%s4198_s17 + $0x1b0] sm:$0xff]  ;;  %v4345_v39 = vld [vmem:[%s4198_s17 + $0x1c0] sm:$0xff] }
  0x2a   : > { %v4348_v40 = vld [vmem:[%s4198_s17 + $0x1d0] sm:$0xff]  ;;  %v4358_v42 = vld [vmem:[%s4198_s17 + $0x1e0] sm:$0xff] }
  0x2b   : > { %3607 = vmatmul.mubr.msk.f32.vlgmr.msra.gmra.mrb[0].mxu0 %vm275_vm0, %v4243_v12  ;;  %v4361_v43 = vld [vmem:[%s4198_s17 + $0x1f0] sm:$0xff]  ;;  %v4368_v44 = vld [vmem:[%s4198_s17 + $0x200] sm:$0xff] }
  0x2c   : > { %3619 = vmatpush3.msra.mxu0 %v3204_v5  ;;  %3609 = vmatprep.mubr.msk.f32.mxu0 %vm275_vm0, %v4246_v13  ;;  %v4371_v45 = vld [vmem:[%s4198_s17 + $0x210] sm:$0xff]  ;;  %v4378_v46 = vld [vmem:[%s4198_s17 + $0x220] sm:$0xff] }
  0x2d   : > { %3632 = vmatprep.subr.mxu0 %v3221_v14  ;;  %v3247_v47 = vld [vmem:[%s4198_s17 + $0x121] sm:$0xff]  ;;  %v3248_v48 = vld [vmem:[%s4198_s17 + $0x131] sm:$0xff] }
  0x2e   : > { %v3249_v49 = vld [vmem:[%s4198_s17 + $0x141] sm:$0xff]  ;;  %v3250_v51 = vld [vmem:[%s4198_s17 + $0x151] sm:$0xff] }
  0x2f   : > { %3610 = vmatmul.mubr.msk.f32.gmra.mrb[2].mxu0 %vm275_vm0, %v4256_v15  ;;  %v3251_v52 = vld [vmem:[%s4198_s17 + $0x161] sm:$0xff]  ;;  %v3252_v53 = vld [vmem:[%s4198_s17 + $0x171] sm:$0xff] }
  0x30   : > { %3612 = vmatprep.mubr.msk.f32.mxu0 %vm275_vm0, %v4259_v16  ;;  %v3253_v54 = vld [vmem:[%s4198_s17 + $0x181] sm:$0xff]  ;;  %v3254_v55 = vld [vmem:[%s4198_s17 + $0x191] sm:$0xff] }
  0x31   : > { %v3271_v57 = vld [vmem:[%s4198_s17 + $0x80] sm:$0xff]  ;;  %v3288_v58 = vld [vmem:[%s4198_s17 + $0x110] sm:$0xff] }
  0x32   : > { %v3305_v59 = vld [vmem:[%s4198_s17 + $0x81] sm:$0xff] }
  0x33   : > { %3613 = vmatmul.mubr.msk.f32.gmra.mrb[4].mxu0 %vm275_vm0, %v4266_v17 }
  0x34   : > { %3615 = vmatprep.mubr.msk.f32.mxu0 %vm275_vm0, %v4269_v18 }
  0x37   : > { %3616 = vmatmul.mubr.msk.f32.gmra.mrb[6].mxu0 %vm275_vm0, %v4276_v19 }
  0x38   : > { %3620 = vmatprep.mubr.msk.f32.mxu0 %vm275_vm0, %v534_v20 }
  0x3b   : > { %3621 = vmatmul.mubr.msk.f32.vlgmr.msra.gmra.mrb[0].mxu0 %vm275_vm0, %v4283_v21 }
  0x3c   : > { %3633 = vmatpush3.msra.mxu0 %v3221_v14  ;;  %3623 = vmatprep.mubr.msk.f32.mxu0 %vm275_vm0, %v4286_v22 }
  0x3d   : > { %3646 = vmatprep.subr.mxu0 %v3238_v23 }
  0x3f   : > { %3624 = vmatmul.mubr.msk.f32.gmra.mrb[2].mxu0 %vm275_vm0, %v4296_v24 }
  0x40   : > { %3626 = vmatprep.mubr.msk.f32.mxu0 %vm275_vm0, %v4299_v25 }
  0x43   : > { %3627 = vmatmul.mubr.msk.f32.gmra.mrb[4].mxu0 %vm275_vm0, %v4306_v26 }
  0x44   : > { %3629 = vmatprep.mubr.msk.f32.mxu0 %vm275_vm0, %v4309_v27 }
  0x47   : > { %3630 = vmatmul.mubr.msk.f32.gmra.mrb[6].mxu0 %vm275_vm0, %v4316_v28 }
  0x48   : > { %3634 = vmatprep.mubr.msk.f32.mxu0 %vm275_vm0, %v3213_v29 }
  0x4b   : > { %3635 = vmatmul.mubr.msk.f32.vlgmr.msra.gmra.mrb[0].mxu0 %vm275_vm0, %v3214_v30 }
  0x4c   : > { %3647 = vmatpush3.msra.mxu0 %v3238_v23  ;;  %3637 = vmatprep.mubr.msk.f32.mxu0 %vm275_vm0, %v3215_v31 }
  0x4d   : > { %3660 = vmatprep.subr.mxu0 %v3255_v32 }
  0x4f   : > { %3638 = vmatmul.mubr.msk.f32.gmra.mrb[2].mxu0 %vm275_vm0, %v3216_v33 }
  0x50   : > { %3640 = vmatprep.mubr.msk.f32.mxu0 %vm275_vm0, %v3217_v34 }
  0x53   : > { %3641 = vmatmul.mubr.msk.f32.gmra.mrb[4].mxu0 %vm275_vm0, %v3218_v35 }
  0x54   : > { %3643 = vmatprep.mubr.msk.f32.mxu0 %vm275_vm0, %v3219_v36 }
  0x57   : > { %3644 = vmatmul.mubr.msk.f32.gmra.mrb[6].mxu0 %vm275_vm0, %v3220_v37 }
  0x58   : > { %3648 = vmatprep.mubr.msk.f32.mxu0 %vm275_vm0, %v4339_v38 }
  0x5b   : > { %3649 = vmatmul.mubr.msk.f32.vlgmr.msra.gmra.mrb[0].mxu0 %vm275_vm0, %v4345_v39 }
  0x5c   : > { %3661 = vmatpush3.msra.mxu0 %v3255_v32  ;;  %3651 = vmatprep.mubr.msk.f32.mxu0 %vm275_vm0, %v4348_v40 }
  0x5d   : > { %3674 = vmatprep.subr.mxu0 %v3272_v41 }
  0x5f   : > { %3652 = vmatmul.mubr.msk.f32.gmra.mrb[2].mxu0 %vm275_vm0, %v4358_v42 }
  0x60   : > { %3654 = vmatprep.mubr.msk.f32.mxu0 %vm275_vm0, %v4361_v43 }
  0x63   : > { %3655 = vmatmul.mubr.msk.f32.gmra.mrb[4].mxu0 %vm275_vm0, %v4368_v44 }
  0x64   : > { %3657 = vmatprep.mubr.msk.f32.mxu0 %vm275_vm0, %v4371_v45 }
  0x67   : > { %3658 = vmatmul.mubr.msk.f32.gmra.mrb[6].mxu0 %vm275_vm0, %v4378_v46 }
  0x68   : > { %3662 = vmatprep.mubr.msk.f32.mxu0 %vm275_vm0, %v3247_v47  ;;  %v3334_v47 = vld [vmem:[%s4758_s2 + $0x10] sm:$0xff] }
  0x6b   : > { %3663 = vmatmul.mubr.msk.f32.vlgmr.msra.gmra.mrb[0].mxu0 %vm275_vm0, %v3248_v48 }
  0x6c   : > { %3675 = vmatpush3.msra.mxu0 %v3272_v41  ;;  %3665 = vmatprep.mubr.msk.f32.mxu0 %vm275_vm0, %v3249_v49  ;;  %v1635_v49 = vld [vmem:[#allocation2] sm:$0xff] }
  0x6d   : > { %3688 = vmatprep.subr.mxu0 %v3289_v50 }
  0x6f   : > { %3666 = vmatmul.mubr.msk.f32.gmra.mrb[2].mxu0 %vm275_vm0, %v3250_v51 }
  0x70   : > { %3668 = vmatprep.mubr.msk.f32.mxu0 %vm275_vm0, %v3251_v52  ;;  %v3343_v52 = vld [vmem:[%s4758_s2 + $0x18] sm:$0xff] }
  0x73   : > { %3669 = vmatmul.mubr.msk.f32.gmra.mrb[4].mxu0 %vm275_vm0, %v3252_v53 }
  0x74   : > { %3671 = vmatprep.mubr.msk.f32.mxu0 %vm275_vm0, %v3253_v54 }
  0x77   : > { %3672 = vmatmul.mubr.msk.f32.gmra.mrb[6].mxu0 %vm275_vm0, %v3254_v55 }
  0x78   : > { %3676 = vmatprep.mubr.msk.f32.mxu0 %vm275_vm0, %v4243_v12 }
  0x7b   : > { %3677 = vmatmul.mubr.msk.f32.vlgmr.msra.gmra.mrb[0].mxu0 %vm275_vm0, %v4246_v13 }
  0x7c   : > { %3689 = vmatpush3.msra.mxu0 %v3289_v50  ;;  %3679 = vmatprep.mubr.msk.f32.mxu0 %vm275_vm0, %v4256_v15 }
  0x7d   : > { %3702 = vmatprep.subr.mxu0 %v3306_v56 }
  0x7f   : > { %3680 = vmatmul.mubr.msk.f32.gmra.mrb[2].mxu0 %vm275_vm0, %v4259_v16 }
  0x80   : > { %3682 = vmatprep.mubr.msk.f32.mxu0 %vm275_vm0, %v4266_v17 }
  0x83   : > { %3683 = vmatmul.mubr.msk.f32.gmra.mrb[4].mxu0 %vm275_vm0, %v4269_v18 }
  0x84   : > { %3685 = vmatprep.mubr.msk.f32.mxu0 %vm275_vm0, %v4276_v19 }
  0x87   : > { %3686 = vmatmul.mubr.msk.f32.gmra.mrb[6].mxu0 %vm275_vm0, %v3271_v57 }
  0x88   : > { %3690 = vmatprep.mubr.msk.f32.mxu0 %vm275_vm0, %v4202_v3 }
  0x8b   : > { %3691 = vmatmul.mubr.msk.f32.vlgmr.msra.gmra.mrb[0].mxu0 %vm275_vm0, %v4205_v4 }
  0x8c   : > { %3703 = vmatpush3.msra.mxu0 %v3306_v56  ;;  %3693 = vmatprep.mubr.msk.f32.mxu0 %vm275_vm0, %v4216_v6 }
  0x8d   : > { %3716 = vmatprep.subr.mxu0 %v3317_v61 }
  0x8f   : > { %3694 = vmatmul.mubr.msk.f32.gmra.mrb[2].mxu0 %vm275_vm0, %v4219_v7 }
  0x90   : > { %3696 = vmatprep.mubr.msk.f32.mxu0 %vm275_vm0, %v4226_v8 }
  0x93   : > { %3697 = vmatmul.mubr.msk.f32.gmra.mrb[4].mxu0 %vm275_vm0, %v4229_v9 }
  0x94   : > { %3699 = vmatprep.mubr.msk.f32.mxu0 %vm275_vm0, %v4236_v10 }
  0x97   : > { %3700 = vmatmul.mubr.msk.f32.gmra.mrb[6].mxu0 %vm275_vm0, %v3288_v58  ;;  %v1912_v58 = vld [vmem:[#allocation2 + $0x2] sm:$0xff] }
  0x98   : > { %3704 = vmatprep.mubr.msk.f32.mxu0 %vm275_vm0, %v4283_v21 }
  0x9b   : > { %3705 = vmatmul.mubr.msk.f32.vlgmr.msra.gmra.mrb[0].mxu0 %vm275_vm0, %v4286_v22 }
  0x9c   : > { %3707 = vmatprep.mubr.msk.f32.mxu0 %vm275_vm0, %v4296_v24  ;;  %3717 = vmatpush3.msra.mxu0 %v3317_v61  ;;  %v3352_v61 = vld [vmem:[%s4758_s2 + $0x20] sm:$0xff] }
  0x9f   : > { %3708 = vmatmul.mubr.msk.f32.gmra.mrb[2].mxu0 %vm275_vm0, %v4299_v25 }
  0xa0   : > { %3710 = vmatprep.mubr.msk.f32.mxu0 %vm275_vm0, %v4306_v26 }
  0xa3   : > { %3711 = vmatmul.mubr.msk.f32.gmra.mrb[4].mxu0 %vm275_vm0, %v4309_v27 }
  0xa4   : > { %3713 = vmatprep.mubr.msk.f32.mxu0 %vm275_vm0, %v4316_v28 }
  0xa7   : > { %3714 = vmatmul.mubr.msk.f32.gmra.mrb[6].mxu0 %vm275_vm0, %v3305_v59 }
  0xa8   : > { %3718 = vmatprep.mubr.msk.f32.mxu0 %vm275_vm0, %v1644_v62 }
 0x16e   : > { %v3706_v1 = vpop.f32.mrb[0].mxu0 }
 0x16f   : > { %v1575_v3 = vmul.f32 %v3706_v1, %v3315_v0  ;;  %v1520_v4 = vpop.f32.mrb[1].mxu0 }
 0x170   : > { %v1574_v5 = vmul.f32 %v3315_v0, %v1520_v4  ;;  %v3361_v4 = vld [vmem:[%s4758_s2 + $0x28] sm:$0xff] }
 0x171   : > { %v1590_v6 = vadd.f32 %v3316_v2, %v1575_v3 }
 0x172   : > { %v1589_v7 = vadd.f32 %v3316_v2, %v1574_v5  ;;  %v3709_v8 = vpop.f32.mrb[2].mxu0 }
 0x173   : > { %v1598_v9 = vmax.f32 %v1590_v6, 0.0  ;;  %v1577_v10 = vmul.f32 %v3709_v8, %v3315_v0  ;;  %v1530_v11 = vpop.f32.mrb[3].mxu0  ;;  %v3370_v6 = vld [vmem:[%s4758_s2 + $0x30] sm:$0xff]  ;;  %v3379_v8 = vld [vmem:[%s4758_s2 + $0x38] sm:$0xff] }
 0x174   : > { %v1597_v12 = vmax.f32 %v1589_v7, 0.0  ;;  %v1576_v13 = vmul.f32 %v3315_v0, %v1530_v11  ;;  %v2508_v11 = vld [vmem:[#allocation2 + $0x90] sm:$0xff] }
 0x175   : > { %1628 = vst.msk [vmem:[#allocation2 + $0x21] sm:$0xff] %vm275_vm0, %v1598_v9  ;;  %v1592_v14 = vadd.f32 %v3316_v2, %v1577_v10  ;;  %v3388_v10 = vld [vmem:[%s4758_s2 + $0x40] sm:$0xff] }
 0x176   : > { %1627 = vst.msk [vmem:[#allocation2 + $0x11] sm:$0xff] %vm275_vm0, %v1597_v12  ;;  %v1591_v15 = vadd.f32 %v3316_v2, %v1576_v13  ;;  %v3712_v16 = vpop.f32.mrb[4].mxu0  ;;  %v2950_v12 = vld [vmem:[%s4759_s3] sm:$0xff]  ;;  %v2655_v13 = vld [vmem:[#allocation2 + $0x91] sm:$0xff] }
 0x177   : > { %v1600_v17 = vmax.f32 %v1592_v14, 0.0  ;;  %v1579_v18 = vmul.f32 %v3712_v16, %v3315_v0  ;;  %v1540_v19 = vpop.f32.mrb[5].mxu0  ;;  %v2802_v14 = vld [vmem:[#allocation2 + $0x92] sm:$0xff] }
 0x178   : > { %v1599_v20 = vmax.f32 %v1591_v15, 0.0  ;;  %v1578_v21 = vmul.f32 %v3315_v0, %v1540_v19 }
 0x179   : > { %1630 = vst.msk [vmem:[#allocation2 + $0x41] sm:$0xff] %vm275_vm0, %v1600_v17  ;;  %v1594_v22 = vadd.f32 %v3316_v2, %v1579_v18 }
 0x17a   : > { %1629 = vst.msk [vmem:[#allocation2 + $0x31] sm:$0xff] %vm275_vm0, %v1599_v20  ;;  %v1593_v23 = vadd.f32 %v3316_v2, %v1578_v21  ;;  %v3715_v24 = vpop.f32.mrb[6].mxu0 }
 0x17b   : > { %v1602_v25 = vmax.f32 %v1594_v22, 0.0  ;;  %v1581_v26 = vmul.f32 %v3715_v24, %v3315_v0  ;;  %v1550_v27 = vpop.f32.mrb[7].mxu0 }
 0x17c   : > { %v1601_v28 = vmax.f32 %v1593_v23, 0.0  ;;  %v1580_v29 = vmul.f32 %v3315_v0, %v1550_v27  ;;  %v4495_v33 = vld [vmem:[#allocation2 + $0x21] sm:$0xff] }
 0x17d   : > { %1632 = vst.msk [vmem:[#allocation2 + $0x61] sm:$0xff] %vm275_vm0, %v1602_v25  ;;  %v1596_v30 = vadd.f32 %v3316_v2, %v1581_v26  ;;  %v4490_v31 = vld [vmem:[#allocation2 + $0x11] sm:$0xff]  ;;  %v4529_v53 = vld [vmem:[#allocation2 + $0x20] sm:$0xff] }
 0x17e   : > { %1631 = vst.msk [vmem:[#allocation2 + $0x51] sm:$0xff] %vm275_vm0, %v1601_v28  ;;  %v1595_v32 = vadd.f32 %v3316_v2, %v1580_v29  ;;  %3719 = vmatmul.mubr.msk.f32.vlgmr.msra.gmra.mrb[8].mxu0 %vm275_vm0, %v4490_v31  ;;  %v1636_v51 = vld [vmem:[#allocation2 + $0x10] sm:$0xff]  ;;  %v4558_v62 = vld [vmem:[#allocation2 + $0x22] sm:$0xff] }
 0x17f   : > { %v1604_v34 = vmax.f32 %v1596_v30, 0.0  ;;  %3721 = vmatprep.mubr.msk.f32.mxu0 %vm275_vm0, %v4495_v33  ;;  %v1913_v60 = vld [vmem:[#allocation2 + $0x12] sm:$0xff] }
 0x180   : > { %v1603_v35 = vmax.f32 %v1595_v32, 0.0  ;;  %v4499_v36 = vld [vmem:[#allocation2 + $0x41] sm:$0xff] }
 0x181   : > { %1634 = vst.msk [vmem:[#allocation2 + $0x81] sm:$0xff] %vm275_vm0, %v1604_v34  ;;  %3724 = vmatprep.mubr.msk.f32.mxu1 %vm275_vm0, %v4499_v36  ;;  %v4504_v37 = vld [vmem:[#allocation2 + $0x31] sm:$0xff]  ;;  %v4537_v55 = vld [vmem:[#allocation2 + $0x40] sm:$0xff] }
 0x182   : > { %1633 = vst.msk [vmem:[#allocation2 + $0x71] sm:$0xff] %vm275_vm0, %v1603_v35  ;;  %3722 = vmatmul.mubr.msk.f32.gmra.mrb[10].mxu0 %vm275_vm0, %v4504_v37  ;;  %v4533_v54 = vld [vmem:[#allocation2 + $0x30] sm:$0xff]  ;;  %v4566_v0 = vld [vmem:[#allocation2 + $0x42] sm:$0xff] }
 0x184   : > { %v4516_v48 = vld [vmem:[#allocation2 + $0x61] sm:$0xff] }
 0x185   : > { %v4509_v41 = vld [vmem:[#allocation2 + $0x51] sm:$0xff]  ;;  %v4545_v57 = vld [vmem:[#allocation2 + $0x60] sm:$0xff] }
 0x186   : > { %3725 = vmatmul.mubr.msk.f32.vlgmr.msra.gmra.mrb[0].mxu1 %vm275_vm0, %v4509_v41  ;;  %v4541_v56 = vld [vmem:[#allocation2 + $0x50] sm:$0xff]  ;;  %v4574_v2 = vld [vmem:[#allocation2 + $0x62] sm:$0xff] }
 0x187   : > { %3731 = vmatpush3.msra.mxu1 %v1643_v63  ;;  %3727 = vmatprep.mubr.msk.f32.mxu1 %vm275_vm0, %v4516_v48  ;;  %v4562_v63 = vld [vmem:[#allocation2 + $0x32] sm:$0xff] }
 0x188   : > { %3744 = vmatprep.subr.mxu1 %v3334_v47  ;;  %v4570_v1 = vld [vmem:[#allocation2 + $0x52] sm:$0xff]  ;;  %v2066_v5 = vld [vmem:[#allocation2 + $0x80] sm:$0xff] }
 0x189   : > { %v4520_v50 = vld [vmem:[#allocation2 + $0x71] sm:$0xff]  ;;  %v2213_v7 = vld [vmem:[#allocation2 + $0x81] sm:$0xff] }
 0x18a   : > { %3728 = vmatmul.mubr.msk.f32.gmra.mrb[2].mxu1 %vm275_vm0, %v4520_v50  ;;  %v4549_v59 = vld [vmem:[#allocation2 + $0x70] sm:$0xff]  ;;  %v2360_v9 = vld [vmem:[#allocation2 + $0x82] sm:$0xff] }
 0x18b   : > { %3732 = vmatprep.mubr.msk.f32.mxu1 %vm275_vm0, %v1635_v49  ;;  %v4578_v3 = vld [vmem:[#allocation2 + $0x72] sm:$0xff] }
 0x18e   : > { %3733 = vmatmul.mubr.msk.f32.vlgmr.msra.gmra.mrb[4].mxu1 %vm275_vm0, %v1636_v51 }
 0x18f   : > { %3745 = vmatpush3.msra.mxu1 %v3334_v47  ;;  %3735 = vmatprep.mubr.msk.f32.mxu1 %vm275_vm0, %v4529_v53 }
 0x190   : > { %3758 = vmatprep.subr.mxu1 %v3343_v52 }
 0x192   : > { %3736 = vmatmul.mubr.msk.f32.gmra.mrb[6].mxu1 %vm275_vm0, %v4533_v54 }
 0x193   : > { %3738 = vmatprep.mubr.msk.f32.mxu1 %vm275_vm0, %v4537_v55 }
 0x196   : > { %3739 = vmatmul.mubr.msk.f32.gmra.mrb[0].mxu1 %vm275_vm0, %v4541_v56 }
 0x197   : > { %3741 = vmatprep.mubr.msk.f32.mxu1 %vm275_vm0, %v4545_v57 }
 0x19a   : > { %3742 = vmatmul.mubr.msk.f32.gmra.mrb[2].mxu1 %vm275_vm0, %v4549_v59 }
 0x19b   : > { %3746 = vmatprep.mubr.msk.f32.mxu1 %vm275_vm0, %v1912_v58 }
 0x19e   : > { %3747 = vmatmul.mubr.msk.f32.vlgmr.msra.gmra.mrb[4].mxu1 %vm275_vm0, %v1913_v60 }
 0x19f   : > { %3759 = vmatpush3.msra.mxu1 %v3343_v52  ;;  %3749 = vmatprep.mubr.msk.f32.mxu1 %vm275_vm0, %v4558_v62 }
 0x1a0   : > { %3772 = vmatprep.subr.mxu1 %v3352_v61 }
 0x1a2   : > { %3750 = vmatmul.mubr.msk.f32.gmra.mrb[6].mxu1 %vm275_vm0, %v4562_v63 }
 0x1a3   : > { %3752 = vmatprep.mubr.msk.f32.mxu1 %vm275_vm0, %v4566_v0 }
 0x1a6   : > { %3753 = vmatmul.mubr.msk.f32.gmra.mrb[0].mxu1 %vm275_vm0, %v4570_v1 }
 0x1a7   : > { %3755 = vmatprep.mubr.msk.f32.mxu1 %vm275_vm0, %v4574_v2 }
 0x1aa   : > { %3756 = vmatmul.mubr.msk.f32.gmra.mrb[2].mxu1 %vm275_vm0, %v4578_v3 }
 0x1ab   : > { %3760 = vmatprep.mubr.msk.f32.mxu1 %vm275_vm0, %v1636_v51 }
 0x1ae   : > { %3761 = vmatmul.mubr.msk.f32.vlgmr.msra.gmra.mrb[4].mxu1 %vm275_vm0, %v4529_v53 }
 0x1af   : > { %3773 = vmatpush3.msra.mxu1 %v3352_v61  ;;  %3763 = vmatprep.mubr.msk.f32.mxu1 %vm275_vm0, %v4533_v54 }
 0x1b0   : > { %3786 = vmatprep.subr.mxu1 %v3361_v4 }
 0x1b2   : > { %3764 = vmatmul.mubr.msk.f32.gmra.mrb[6].mxu1 %vm275_vm0, %v4537_v55 }
 0x1b3   : > { %3766 = vmatprep.mubr.msk.f32.mxu1 %vm275_vm0, %v4541_v56 }
 0x1b6   : > { %3767 = vmatmul.mubr.msk.f32.gmra.mrb[0].mxu1 %vm275_vm0, %v4545_v57 }
 0x1b7   : > { %3769 = vmatprep.mubr.msk.f32.mxu1 %vm275_vm0, %v4549_v59 }
 0x1ba   : > { %3770 = vmatmul.mubr.msk.f32.gmra.mrb[2].mxu1 %vm275_vm0, %v2066_v5 }
 0x1bb   : > { %3774 = vmatprep.mubr.msk.f32.mxu1 %vm275_vm0, %v4490_v31 }
 0x1be   : > { %3775 = vmatmul.mubr.msk.f32.vlgmr.msra.gmra.mrb[4].mxu1 %vm275_vm0, %v4495_v33 }
 0x1bf   : > { %3787 = vmatpush3.msra.mxu1 %v3361_v4  ;;  %3777 = vmatprep.mubr.msk.f32.mxu1 %vm275_vm0, %v4504_v37 }
 0x1c0   : > { %3800 = vmatprep.subr.mxu1 %v3370_v6 }
 0x1c2   : > { %3778 = vmatmul.mubr.msk.f32.gmra.mrb[6].mxu1 %vm275_vm0, %v4499_v36 }
 0x1c3   : > { %3780 = vmatprep.mubr.msk.f32.mxu1 %vm275_vm0, %v4509_v41 }
 0x1c6   : > { %3781 = vmatmul.mubr.msk.f32.gmra.mrb[0].mxu1 %vm275_vm0, %v4516_v48 }
 0x1c7   : > { %3783 = vmatprep.mubr.msk.f32.mxu1 %vm275_vm0, %v4520_v50 }
 0x1ca   : > { %3784 = vmatmul.mubr.msk.f32.gmra.mrb[2].mxu1 %vm275_vm0, %v2213_v7 }
 0x1cb   : > { %3788 = vmatprep.mubr.msk.f32.mxu1 %vm275_vm0, %v1913_v60 }
 0x1ce   : > { %3789 = vmatmul.mubr.msk.f32.vlgmr.msra.gmra.mrb[4].mxu1 %vm275_vm0, %v4558_v62 }
 0x1cf   : > { %3801 = vmatpush3.msra.mxu1 %v3370_v6  ;;  %3791 = vmatprep.mubr.msk.f32.mxu1 %vm275_vm0, %v4562_v63 }
 0x1d0   : > { %3814 = vmatprep.subr.mxu1 %v3379_v8 }
 0x1d2   : > { %3792 = vmatmul.mubr.msk.f32.gmra.mrb[6].mxu1 %vm275_vm0, %v4566_v0 }
 0x1d3   : > { %3794 = vmatprep.mubr.msk.f32.mxu1 %vm275_vm0, %v4570_v1 }
 0x1d6   : > { %3795 = vmatmul.mubr.msk.f32.gmra.mrb[0].mxu1 %vm275_vm0, %v4574_v2 }
 0x1d7   : > { %3797 = vmatprep.mubr.msk.f32.mxu1 %vm275_vm0, %v4578_v3 }
 0x1da   : > { %3798 = vmatmul.mubr.msk.f32.gmra.mrb[2].mxu1 %vm275_vm0, %v2360_v9 }
 0x1db   : > { %3802 = vmatprep.mubr.msk.f32.mxu1 %vm275_vm0, %v4529_v53 }
 0x1de   : > { %3803 = vmatmul.mubr.msk.f32.vlgmr.msra.gmra.mrb[4].mxu1 %vm275_vm0, %v4533_v54 }
 0x1df   : > { %3815 = vmatpush3.msra.mxu1 %v3379_v8  ;;  %3805 = vmatprep.mubr.msk.f32.mxu1 %vm275_vm0, %v4537_v55 }
 0x1e0   : > { %3828 = vmatprep.subr.mxu1 %v3388_v10 }
 0x1e2   : > { %3806 = vmatmul.mubr.msk.f32.gmra.mrb[6].mxu1 %vm275_vm0, %v4541_v56 }
 0x1e3   : > { %3808 = vmatprep.mubr.msk.f32.mxu1 %vm275_vm0, %v4545_v57 }
 0x1e6   : > { %3809 = vmatmul.mubr.msk.f32.gmra.mrb[0].mxu1 %vm275_vm0, %v4549_v59 }
 0x1e7   : > { %3811 = vmatprep.mubr.msk.f32.mxu1 %vm275_vm0, %v2066_v5 }
 0x1ea   : > { %3812 = vmatmul.mubr.msk.f32.gmra.mrb[2].mxu1 %vm275_vm0, %v2508_v11 }
 0x1eb   : > { %3816 = vmatprep.mubr.msk.f32.mxu1 %vm275_vm0, %v4495_v33 }
 0x1ee   : > { %3817 = vmatmul.mubr.msk.f32.vlgmr.msra.gmra.mrb[4].mxu1 %vm275_vm0, %v4504_v37 }
 0x1ef   : > { %3829 = vmatpush3.msra.mxu1 %v3388_v10  ;;  %3819 = vmatprep.mubr.msk.f32.mxu1 %vm275_vm0, %v4499_v36 }
 0x1f0   : > { %3842 = vmatprep.subr.mxu1 %v2950_v12 }
 0x1f2   : > { %3820 = vmatmul.mubr.msk.f32.gmra.mrb[6].mxu1 %vm275_vm0, %v4509_v41 }
 0x1f3   : > { %3822 = vmatprep.mubr.msk.f32.mxu1 %vm275_vm0, %v4516_v48 }
 0x1f6   : > { %3823 = vmatmul.mubr.msk.f32.gmra.mrb[0].mxu1 %vm275_vm0, %v4520_v50 }
 0x1f7   : > { %3825 = vmatprep.mubr.msk.f32.mxu1 %vm275_vm0, %v2213_v7 }
 0x1fa   : > { %3826 = vmatmul.mubr.msk.f32.gmra.mrb[2].mxu1 %vm275_vm0, %v2655_v13 }
 0x1fb   : > { %3830 = vmatprep.mubr.msk.f32.mxu1 %vm275_vm0, %v4558_v62 }
 0x1fe   : > { %3831 = vmatmul.mubr.msk.f32.vlgmr.msra.gmra.mrb[4].mxu1 %vm275_vm0, %v4562_v63 }
 0x1ff   : > { %3843 = vmatpush3.msra.mxu1 %v2950_v12  ;;  %3833 = vmatprep.mubr.msk.f32.mxu1 %vm275_vm0, %v4566_v0 }
 0x202   : > { %3834 = vmatmul.mubr.msk.f32.gmra.mrb[6].mxu1 %vm275_vm0, %v4570_v1 }
 0x203   : > { %3836 = vmatprep.mubr.msk.f32.mxu1 %vm275_vm0, %v4574_v2 }
 0x206   : > { %3837 = vmatmul.mubr.msk.f32.gmra.mrb[0].mxu1 %vm275_vm0, %v4578_v3 }
 0x207   : > { %3839 = vmatprep.mubr.msk.f32.mxu1 %vm275_vm0, %v2360_v9 }
 0x20a   : > { %3840 = vmatmul.mubr.msk.f32.gmra.mrb[2].mxu1 %vm275_vm0, %v2802_v14 }
 0x20b   : > { %3844 = vmatprep.mubr.msk.f32.mxu1 %vm275_vm0, %v4339_v38 }
 0x20e   : > { %3845 = vmatmul.mubr.msk.f32.vlgmr.msra.gmra.mrb[4].mxu1 %vm275_vm0, %v4345_v39 }
 0x20f   : > { %3847 = vmatprep.mubr.msk.f32.mxu1 %vm275_vm0, %v4348_v40 }
 0x212   : > { %3848 = vmatmul.mubr.msk.f32.gmra.mrb[6].mxu1 %vm275_vm0, %v4358_v42 }
 0x213   : > { %3850 = vmatprep.mubr.msk.f32.mxu1 %vm275_vm0, %v4361_v43 }
 0x216   : > { %3851 = vmatmul.mubr.msk.f32.gmra.mrb[0].mxu1 %vm275_vm0, %v4368_v44 }
 0x217   : > { %3853 = vmatprep.mubr.msk.f32.mxu1 %vm275_vm0, %v4371_v45 }
 0x21a   : > { %3854 = vmatmul.mubr.msk.f32.gmra.mrb[2].mxu1 %vm275_vm0, %v4378_v46 }
 0x251   : > { %v3720_v38 = vpop.f32.mrb[8].mxu0 }
 0x252   : > { %v1744_v39 = vpop.f32.mrb[9].mxu0 }
 0x255   : > { %v3723_v15 = vpop.f32.mrb[10].mxu0 }
 0x256   : > { %v1754_v16 = vpop.f32.mrb[11].mxu0 }
 0x2e1   : > { %v3846_v40 = vpop.f32.mrb[4].mxu1 }
 0x2e2   : > { %v3858_v42 = vadd.f32 %v3846_v40, %v3720_v38  ;;  %v3041_v17 = vpop.f32.mrb[5].mxu1 }
 0x2e3   : > { %v3859_v43 = vadd.f32 %v3041_v17, %v1744_v39 }
 0x2e4   : > { %3089 = vst.msk [vmem:[%s247_s13 + $0x8] sm:$0xff] %vm275_vm0, %v3858_v42 }
 0x2e5   : > { %3088 = vst.msk [vmem:[%s247_s13] sm:$0xff] %vm275_vm0, %v3859_v43  ;;  %v3849_v44 = vpop.f32.mrb[6].mxu1 }
 0x2e6   : > { %v3860_v45 = vadd.f32 %v3849_v44, %v3723_v15  ;;  %v3051_v18 = vpop.f32.mrb[7].mxu1 }
 0x2e7   : > { %v3861_v46 = vadd.f32 %v3051_v18, %v1754_v16 }
 0x2e8   : > { %3091 = vst.msk [vmem:[%s247_s13 + $0x18] sm:$0xff] %vm275_vm0, %v3860_v45 }
 0x2e9   : > { %3090 = vst.msk [vmem:[%s247_s13 + $0x10] sm:$0xff] %vm275_vm0, %v3861_v46  ;;  %v3852_v19 = vpop.f32.mrb[0].mxu1 }
 0x2ea   : > { %3093 = vst.msk [vmem:[%s247_s13 + $0x28] sm:$0xff] %vm275_vm0, %v3852_v19  ;;  %v3061_v20 = vpop.f32.mrb[1].mxu1 }
 0x2eb   : > { %3092 = vst.msk [vmem:[%s247_s13 + $0x20] sm:$0xff] %vm275_vm0, %v3061_v20 }
 0x2ed   : > { %v3855_v21 = vpop.f32.mrb[2].mxu1 }
 0x2ee   : > { %3095 = vst.msk [vmem:[%s247_s13 + $0x38] sm:$0xff] %vm275_vm0, %v3855_v21  ;;  %v3071_v22 = vpop.f32.mrb[3].mxu1 }
 0x2ef   : > { %3094 = vst.msk [vmem:[%s247_s13 + $0x30] sm:$0xff] %vm275_vm0, %v3071_v22 }
 0x2f0   : > { %4050 = shalt.err (!%p4047_p3)
}
 0x2f1   : > { %s4051_s29 = scalar_lea.hbm %s4709_s18, 1024  ;;  %s4055_s11 = scalar_lea.hbm %s4762_s6, 2048 }
 0x2f2   : > { %p4052_p4 = scmp.ne.s32.totalorder %s4709_s18, %s4051_s29  ;;  %p4056_p9 = scmp.lt.u32.totalorder %s4709_s18, %s4762_s6 }
 0x2f3   : > { %p4057_p10 = scmp.lt.u32.totalorder %s4055_s11, %s4051_s29  ;;  %p4059_p12 = scmp.lt.u32.totalorder %s4051_s29, %s4709_s18 }
 0x2f4   : > { %p4053_p7 = pnand %p4052_p4, %p4178_p5 }
 0x2f5   : > { %p4058_p11 = por %p4057_p10, %p4056_p9 }
 0x2f6   : > { %p4054_p8 = pneg %p4053_p7 }
 0x2f7   : > { %p4060_p13 = por %p4059_p12, %p4058_p11 }
 0x2f9   : > { %p4061_p0 = pnand %p4060_p13, %p4054_p8 }
 0x2fb   : > { %4064 = shalt.err (!%p4061_p0)
}
 0x2fc   : > { %s4103_s14 = smov 128   ;;  %s4104_s16 = smov 8  }
 0x2fd   : > { %3995 = dma.vmem_to_hbm [thread:$0]  (%p4178_p5), %s4711_s15, 1024, %s4709_s18, %s4715_s25, %s4103_s14, %s4103_s14, %s4104_s16  }
 0x2fe PF: > { %p4001_p1 = scmp.ge.s32.totalorder %s4099_s24, 2  ;;  %s3125_s17 = sand.u32 1, %s4087_s21  }
 0x2ff   : > { %s3126_s19 = scalar_lea.sflag [#allocation4], %s3125_s17 }
 0x300   : > { %p3998_p2 = pnand %p4001_p1, %p4182_p6 }
 0x302   : > { %4082 = dma.done.wait (!%p3998_p2), %s3126_s19, 1024  }
 0x303   : > { %4084 = vsyncadd (!%p3998_p2), %s3126_s19, 4294966272  ;;  %p16_p3 = scmp.ge.s32.totalorder %s4165_s27, 4   ;;  %s4765_s21 = smov %s4091_s22 }
 0x304   : > { %s4766_s22 = smov %s4095_s23  ;;  %s4767_s23 = smov %s4176_s30 }
 0x305   : > { %s4768_s24 = smov %s4165_s27  ;;  %18 = sbr.rel (!%p16_p3) target bundleno = 3 (0x3), region = 102 }
 0x30c   :  { %3131 = vsyncpa [#allocation4], 1 }
 0x30d   :  { %3133 = vsyncpa [#allocation4 + $0x1], 1 }

// kernel: tpu_custom_call.1
= control target key start
LH: loop header
LB: loop body
LE: loop exit
PB: predicated region body
PF: predicated region fallthrough
CT: control target
= control target key end

     0   :  { %11 = vsyncpa [#allocation4], 0  ;;  %s4756_s0 = inlined_call_operand.vmem [shape: f32[8,9,9,8], index: 0, kind: input, shape index: {}]   ;;  %s4757_s1 = inlined_call_operand.vmem [shape: f32[9,8,8], index: 1, kind: input, shape index: {}]   ;;  %s4758_s2 = inlined_call_operand.vmem [shape: f32[9,8,8], index: 2, kind: input, shape index: {}]   ;;  %s4759_s3 = inlined_call_operand.vmem [shape: f32[8,8], index: 3, kind: input, shape index: {}]   ;;  %s4760_s4 = inlined_call_operand.vmem [shape: f32[1,8], index: 4, kind: input, shape index: {}]   ;;  %s4761_s5 = inlined_call_operand.vmem [shape: f32[1,8], index: 5, kind: input, shape index: {}]   ;;  %s4762_s6 = inlined_call_operand.hbm [shape: f32[2,8,8,8], index: 6, kind: output, shape index: {}]  }
   0x1   :  { %13 = vsyncpa [#allocation4 + $0x1], 0  ;;  %s4140_s21 = smov 0   ;;  %s4142_s22 = smov 0  }
   0x2   :  { %s4144_s23 = smov 0   ;;  %s4146_s24 = smov 0  }
   0x3 LB: > { %s4161_s25 = sadd.s32 4294967295, %s4099_s24   ;;  %s3172_s26 = sadd.s32 4294967294, %s4099_s24   ;;  %s4099_s24 = sphi %s4146_s24, %s4768_s24   ;;  %s4095_s23 = sphi %s4144_s23, %s4767_s23   ;;  %s4091_s22 = sphi %s4142_s22, %s4766_s22   ;;  %s4087_s21 = sphi %s4140_s21, %s4765_s21  }
   0x4   : > { %s4165_s27 = sadd.s32 1, %s4099_s24   ;;  %s157_s28 = sadd.s32 1, %s4095_s23 }
   0x5   : > { %s154_s29 = ssub.s32 %s4099_s24, %s4165_s27  ;;  %p167_p0 = scmp.ne.s32.totalorder %s4095_s23, %s4091_s22 }
   0x6   : > { %p155_p1 = scmp.eq.s32.totalorder %s154_s29, 0  ;;  %p168_p2 = scmp.eq.s32.totalorder %s4161_s25, 1 }
   0x7   : > { %p173_p3 = scmp.ne.s32.totalorder %s4091_s22, %s4087_s21  ;;  %p174_p4 = scmp.eq.s32.totalorder %s3172_s26, 1 }
   0x8   : > { %s4176_s30 = scalar_select %p155_p1, %s4095_s23, %s157_s28  }
   0x9   : > { %p4178_p5 = por %p168_p2, %p167_p0  ;;  %p4182_p6 = por %p174_p4, %p173_p3 }
   0xa   : > { %p3175_p7 = scmp.ge.s32.totalorder %s4099_s24, 1  ;;  %p217_p8 = scmp.lt.s32.totalorder %s4099_s24, 3 }
   0xc   : > { %p218_p9 = pnand %p3175_p7, %p217_p8 }
   0xd   : > { %v3187_v0 = vld [vmem:[%s4757_s1 + $0x8] sm:$0xff] (!%p218_p9)  ;;  %s3177_s11 = sshll.u32 (!%p218_p9), %s4161_s25, 2  ;;  %v263_v1 = vld [vmem:[%s4757_s1] sm:$0xff] (!%p218_p9)  ;;  %vm275_vm0 = vcmask (!%p218_p9), 64512   ;;  %v3204_v5 = vld [vmem:[%s4757_s1 + $0x10] sm:$0xff] (!%p218_p9)  ;;  %vm1606_vm1 = vcmask (!%p218_p9), 58368  }
   0xe   : > { %221 = sbr.rel (%p218_p9) target bundleno = 766 (0x2fe), region = 44  ;;  %3590 = vmatprep.subr.mxu0 (!%p218_p9), %v3187_v0  ;;  %p249_p10 = scmp.lt.s32.totalorder (!%p218_p9), %s3177_s11, 7  ;;  %v3221_v14 = vld [vmem:[%s4757_s1 + $0x18] sm:$0xff] (!%p218_p9)  ;;  %v3238_v23 = vld [vmem:[%s4757_s1 + $0x20] sm:$0xff] (!%p218_p9)  ;;  %v3255_v32 = vld [vmem:[%s4757_s1 + $0x28] sm:$0xff] (!%p218_p9)  ;;  %v4101_v60 = vmov (!%p218_p9), 0.0  }
   0xf   : > { %3591 = vmatpush3.msra.mxu0 (!%p218_p9), %v3187_v0  ;;  %v3272_v41 = vld [vmem:[%s4757_s1 + $0x30] sm:$0xff] (!%p218_p9)  ;;  %v3289_v50 = vld [vmem:[%s4757_s1 + $0x38] sm:$0xff] (!%p218_p9)  ;;  %v3306_v56 = vld [vmem:[%s4757_s1 + $0x40] sm:$0xff] (!%p218_p9)  ;;  %1610 = vst.msk [vmem:[#allocation2 + $0x20] sm:$0xff] (!%p218_p9), %vm275_vm0, %v4101_v60  ;;  %s4102_s20 = smov (!%p218_p9), [#allocation3]  }
  0x10   : > { %3604 = vmatprep.subr.mxu0 (!%p218_p9), %v263_v1  ;;  %1611 = vst.msk [vmem:[#allocation2 + $0x28] sm:$0x3] (!%p218_p9), %vm1606_vm1, %v4101_v60  ;;  %1607 = vst.msk [vmem:[#allocation2 + $0x8] sm:$0x3] (!%p218_p9), %vm1606_vm1, %v4101_v60  ;;  %v3317_v61 = vld [vmem:[%s4758_s2 + $0x8] sm:$0xff] (!%p218_p9)  ;;  %v1643_v63 = vld [vmem:[%s4758_s2] sm:$0xff] (!%p218_p9) }
  0x11   : > { %1605 = vst.msk [vmem:[#allocation2] sm:$0xff] (!%p218_p9), %vm275_vm0, %v4101_v60  ;;  %1608 = vst.msk [vmem:[#allocation2 + $0x10] sm:$0xff] (!%p218_p9), %vm275_vm0, %v4101_v60  ;;  %3856 = vmatprep.subr.mxu1 (!%p218_p9), %v3317_v61  ;;  %v3315_v0 = vld [vmem:[%s4760_s4] ss:$0 sm:$0xff] (!%p218_p9)  ;;  %s4041_s26 = sshll.u32 (!%p218_p9), %s4102_s20, 4  ;;  %s4042_s26 = int_to_ptr.vmem [resolvable:$false] %s4041_s26 }
  0x12   : > { %1609 = vst.msk [vmem:[#allocation2 + $0x18] sm:$0x3] (!%p218_p9), %vm1606_vm1, %v4101_v60  ;;  %1613 = vst.msk [vmem:[#allocation2 + $0x38] sm:$0x3] (!%p218_p9), %vm1606_vm1, %v4101_v60  ;;  %3857 = vmatpush3.msra.mxu1 (!%p218_p9), %v3317_v61  ;;  %s4043_s28 = scalar_lea.vmem (!%p218_p9), %s4042_s26, 2048 }
  0x13   : > { %1612 = vst.msk [vmem:[#allocation2 + $0x30] sm:$0xff] (!%p218_p9), %vm275_vm0, %v4101_v60  ;;  %1614 = vst.msk [vmem:[#allocation2 + $0x40] sm:$0xff] (!%p218_p9), %vm275_vm0, %v4101_v60  ;;  %3730 = vmatprep.subr.mxu1 (!%p218_p9), %v1643_v63 }
  0x14   : > { %1615 = vst.msk [vmem:[#allocation2 + $0x48] sm:$0x3] (!%p218_p9), %vm1606_vm1, %v4101_v60  ;;  %1617 = vst.msk [vmem:[#allocation2 + $0x58] sm:$0x3] (!%p218_p9), %vm1606_vm1, %v4101_v60 }
  0x15   : > { %s4770_s11 = smov (!%p249_p10, %s3177_s11), 7  ;;  %1616 = vst.msk [vmem:[#allocation2 + $0x50] sm:$0xff] %vm275_vm0, %v4101_v60  ;;  %1618 = vst.msk [vmem:[#allocation2 + $0x60] sm:$0xff] %vm275_vm0, %v4101_v60 }
  0x16   : > { %s3994_s14 = smul.u32 144, %s4770_s11  ;;  %1619 = vst.msk [vmem:[#allocation2 + $0x68] sm:$0x3] %vm1606_vm1, %v4101_v60  ;;  %1621 = vst.msk [vmem:[#allocation2 + $0x78] sm:$0x3] %vm1606_vm1, %v4101_v60  ;;  %s245_s11 = sand.u32 1, %s4091_s22  }
  0x17   : > { %1620 = vst.msk [vmem:[#allocation2 + $0x70] sm:$0xff] %vm275_vm0, %v4101_v60  ;;  %1622 = vst.msk [vmem:[#allocation2 + $0x80] sm:$0xff] %vm275_vm0, %v4101_v60  ;;  %s3176_s12 = sshll.u32 %s245_s11, 6 }
  0x18   : > { %s4198_s17 = scalar_lea.vmem %s4756_s0, %s3994_s14  ;;  %1623 = vst.msk [vmem:[#allocation2 + $0x88] sm:$0x3] %vm1606_vm1, %v4101_v60  ;;  %1625 = vst.msk [vmem:[#allocation2 + $0x98] sm:$0x3] %vm1606_vm1, %v4101_v60  ;;  %v1644_v62 = vld [vmem:[#allocation2 + $0x1] sm:$0xff]  ;;  %s247_s13 = scalar_lea.vmem [#allocation3], %s3176_s12 }
  0x19   : > { %v3179_v2 = vld [vmem:[%s4198_s17 + $0x90] sm:$0xff]  ;;  %v4202_v3 = vld [vmem:[%s4198_s17 + $0xa0] sm:$0xff]  ;;  %1624 = vst.msk [vmem:[#allocation2 + $0x90] sm:$0xff] %vm275_vm0, %v4101_v60  ;;  %s3418_s14 = sshll.u32 %s4161_s25, 10  ;;  %s3110_s15 = sshll.u32 %s247_s13, 4  ;;  %s4711_s15 = int_to_ptr.vmem [resolvable:$true] %s3110_s15 }
  0x1a   : > { %v4205_v4 = vld [vmem:[%s4198_s17 + $0xb0] sm:$0xff]  ;;  %3592 = vmatprep.mubr.msk.f32.mxu0 %vm275_vm0, %v3179_v2  ;;  %v4216_v6 = vld [vmem:[%s4198_s17 + $0xc0] sm:$0xff]  ;;  %s4709_s18 = scalar_lea.hbm %s4762_s6, %s3418_s14  ;;  %s4715_s25 = scalar_lea.sflag [#allocation4], %s245_s11 }
  0x1b   : > { %3593 = vmatmul.mubr.msk.f32.vlgmr.msra.gmra.mrb[0].mxu0 %vm275_vm0, %v4202_v3  ;;  %v4219_v7 = vld [vmem:[%s4198_s17 + $0xd0] sm:$0xff]  ;;  %v4226_v8 = vld [vmem:[%s4198_s17 + $0xe0] sm:$0xff]  ;;  %s4037_s19 = scalar_lea.vmem %s4711_s15, 1024  ;;  %p4044_p0 = scmp.lt.s32.totalorder %s4711_s15, %s4042_s26 }
  0x1c   : > { %3605 = vmatpush3.msra.mxu0 %v263_v1  ;;  %3595 = vmatprep.mubr.msk.f32.mxu0 %vm275_vm0, %v4205_v4  ;;  %v4229_v9 = vld [vmem:[%s4198_s17 + $0xf0] sm:$0xff]  ;;  %v4236_v10 = vld [vmem:[%s4198_s17 + $0x100] sm:$0xff]  ;;  %p4038_p11 = scmp.ne.s32.totalorder %s4711_s15, %s4037_s19  ;;  %p4045_p1 = scmp.lt.s32.totalorder %s4043_s28, %s4037_s19 }
  0x1d   : > { %3618 = vmatprep.subr.mxu0 %v3204_v5  ;;  %v255_v11 = vld [vmem:[%s4198_s17] sm:$0xff]  ;;  %v4243_v12 = vld [vmem:[%s4198_s17 + $0x10] sm:$0xff] }
  0x1e   : > { %v4246_v13 = vld [vmem:[%s4198_s17 + $0x20] sm:$0xff]  ;;  %v4256_v15 = vld [vmem:[%s4198_s17 + $0x30] sm:$0xff]  ;;  %p4039_p12 = pnand %p4038_p11, %p4178_p5  ;;  %p4046_p2 = por %p4045_p1, %p4044_p0 }
  0x1f   : > { %3596 = vmatmul.mubr.msk.f32.gmra.mrb[2].mxu0 %vm275_vm0, %v4216_v6  ;;  %v4259_v16 = vld [vmem:[%s4198_s17 + $0x40] sm:$0xff]  ;;  %v4266_v17 = vld [vmem:[%s4198_s17 + $0x50] sm:$0xff] }
  0x20   : > { %3598 = vmatprep.mubr.msk.f32.mxu0 %vm275_vm0, %v4219_v7  ;;  %v4269_v18 = vld [vmem:[%s4198_s17 + $0x60] sm:$0xff]  ;;  %v4276_v19 = vld [vmem:[%s4198_s17 + $0x70] sm:$0xff]  ;;  %p4040_p13 = pneg %p4039_p12 }
  0x21   : > { %v534_v20 = vld [vmem:[%s4198_s17 + $0x1] sm:$0xff]  ;;  %v4283_v21 = vld [vmem:[%s4198_s17 + $0x11] sm:$0xff]  ;;  %v3316_v2 = vld [vmem:[%s4761_s5] ss:$0 sm:$0xff] }
  0x22   : > { %v4286_v22 = vld [vmem:[%s4198_s17 + $0x21] sm:$0xff]  ;;  %v4296_v24 = vld [vmem:[%s4198_s17 + $0x31] sm:$0xff]  ;;  %p4047_p3 = pnand %p4046_p2, %p4040_p13 }
  0x23   : > { %3599 = vmatmul.mubr.msk.f32.gmra.mrb[4].mxu0 %vm275_vm0, %v4226_v8  ;;  %v4299_v25 = vld [vmem:[%s4198_s17 + $0x41] sm:$0xff]  ;;  %v4306_v26 = vld [vmem:[%s4198_s17 + $0x51] sm:$0xff] }
  0x24   : > { %3601 = vmatprep.mubr.msk.f32.mxu0 %vm275_vm0, %v4229_v9  ;;  %v4309_v27 = vld [vmem:[%s4198_s17 + $0x61] sm:$0xff]  ;;  %v4316_v28 = vld [vmem:[%s4198_s17 + $0x71] sm:$0xff] }
  0x25   : > { %v3213_v29 = vld [vmem:[%s4198_s17 + $0x120] sm:$0xff]  ;;  %v3214_v30 = vld [vmem:[%s4198_s17 + $0x130] sm:$0xff] }
  0x26   : > { %v3215_v31 = vld [vmem:[%s4198_s17 + $0x140] sm:$0xff]  ;;  %v3216_v33 = vld [vmem:[%s4198_s17 + $0x150] sm:$0xff] }
  0x27   : > { %3602 = vmatmul.mubr.msk.f32.gmra.mrb[6].mxu0 %vm275_vm0, %v4236_v10  ;;  %v3217_v34 = vld [vmem:[%s4198_s17 + $0x160] sm:$0xff]  ;;  %v3218_v35 = vld [vmem:[%s4198_s17 + $0x170] sm:$0xff] }
  0x28   : > { %3606 = vmatprep.mubr.msk.f32.mxu0 %vm275_vm0, %v255_v11  ;;  %v3219_v36 = vld [vmem:[%s4198_s17 + $0x180] sm:$0xff]  ;;  %v3220_v37 = vld [vmem:[%s4198_s17 + $0x190] sm:$0xff] }
  0x29   : > { %v4339_v38 = vld [vmem:[%s4198_s17 + $0x1b0] sm:$0xff]  ;;  %v4345_v39 = vld [vmem:[%s4198_s17 + $0x1c0] sm:$0xff] }
  0x2a   : > { %v4348_v40 = vld [vmem:[%s4198_s17 + $0x1d0] sm:$0xff]  ;;  %v4358_v42 = vld [vmem:[%s4198_s17 + $0x1e0] sm:$0xff] }
  0x2b   : > { %3607 = vmatmul.mubr.msk.f32.vlgmr.msra.gmra.mrb[0].mxu0 %vm275_vm0, %v4243_v12  ;;  %v4361_v43 = vld [vmem:[%s4198_s17 + $0x1f0] sm:$0xff]  ;;  %v4368_v44 = vld [vmem:[%s4198_s17 + $0x200] sm:$0xff] }
  0x2c   : > { %3619 = vmatpush3.msra.mxu0 %v3204_v5  ;;  %3609 = vmatprep.mubr.msk.f32.mxu0 %vm275_vm0, %v4246_v13  ;;  %v4371_v45 = vld [vmem:[%s4198_s17 + $0x210] sm:$0xff]  ;;  %v4378_v46 = vld [vmem:[%s4198_s17 + $0x220] sm:$0xff] }
  0x2d   : > { %3632 = vmatprep.subr.mxu0 %v3221_v14  ;;  %v3247_v47 = vld [vmem:[%s4198_s17 + $0x121] sm:$0xff]  ;;  %v3248_v48 = vld [vmem:[%s4198_s17 + $0x131] sm:$0xff] }
  0x2e   : > { %v3249_v49 = vld [vmem:[%s4198_s17 + $0x141] sm:$0xff]  ;;  %v3250_v51 = vld [vmem:[%s4198_s17 + $0x151] sm:$0xff] }
  0x2f   : > { %3610 = vmatmul.mubr.msk.f32.gmra.mrb[2].mxu0 %vm275_vm0, %v4256_v15  ;;  %v3251_v52 = vld [vmem:[%s4198_s17 + $0x161] sm:$0xff]  ;;  %v3252_v53 = vld [vmem:[%s4198_s17 + $0x171] sm:$0xff] }
  0x30   : > { %3612 = vmatprep.mubr.msk.f32.mxu0 %vm275_vm0, %v4259_v16  ;;  %v3253_v54 = vld [vmem:[%s4198_s17 + $0x181] sm:$0xff]  ;;  %v3254_v55 = vld [vmem:[%s4198_s17 + $0x191] sm:$0xff] }
  0x31   : > { %v3271_v57 = vld [vmem:[%s4198_s17 + $0x80] sm:$0xff]  ;;  %v3288_v58 = vld [vmem:[%s4198_s17 + $0x110] sm:$0xff] }
  0x32   : > { %v3305_v59 = vld [vmem:[%s4198_s17 + $0x81] sm:$0xff] }
  0x33   : > { %3613 = vmatmul.mubr.msk.f32.gmra.mrb[4].mxu0 %vm275_vm0, %v4266_v17 }
  0x34   : > { %3615 = vmatprep.mubr.msk.f32.mxu0 %vm275_vm0, %v4269_v18 }
  0x37   : > { %3616 = vmatmul.mubr.msk.f32.gmra.mrb[6].mxu0 %vm275_vm0, %v4276_v19 }
  0x38   : > { %3620 = vmatprep.mubr.msk.f32.mxu0 %vm275_vm0, %v534_v20 }
  0x3b   : > { %3621 = vmatmul.mubr.msk.f32.vlgmr.msra.gmra.mrb[0].mxu0 %vm275_vm0, %v4283_v21 }
  0x3c   : > { %3633 = vmatpush3.msra.mxu0 %v3221_v14  ;;  %3623 = vmatprep.mubr.msk.f32.mxu0 %vm275_vm0, %v4286_v22 }
  0x3d   : > { %3646 = vmatprep.subr.mxu0 %v3238_v23 }
  0x3f   : > { %3624 = vmatmul.mubr.msk.f32.gmra.mrb[2].mxu0 %vm275_vm0, %v4296_v24 }
  0x40   : > { %3626 = vmatprep.mubr.msk.f32.mxu0 %vm275_vm0, %v4299_v25 }
  0x43   : > { %3627 = vmatmul.mubr.msk.f32.gmra.mrb[4].mxu0 %vm275_vm0, %v4306_v26 }
  0x44   : > { %3629 = vmatprep.mubr.msk.f32.mxu0 %vm275_vm0, %v4309_v27 }
  0x47   : > { %3630 = vmatmul.mubr.msk.f32.gmra.mrb[6].mxu0 %vm275_vm0, %v4316_v28 }
  0x48   : > { %3634 = vmatprep.mubr.msk.f32.mxu0 %vm275_vm0, %v3213_v29 }
  0x4b   : > { %3635 = vmatmul.mubr.msk.f32.vlgmr.msra.gmra.mrb[0].mxu0 %vm275_vm0, %v3214_v30 }
  0x4c   : > { %3647 = vmatpush3.msra.mxu0 %v3238_v23  ;;  %3637 = vmatprep.mubr.msk.f32.mxu0 %vm275_vm0, %v3215_v31 }
  0x4d   : > { %3660 = vmatprep.subr.mxu0 %v3255_v32 }
  0x4f   : > { %3638 = vmatmul.mubr.msk.f32.gmra.mrb[2].mxu0 %vm275_vm0, %v3216_v33 }
  0x50   : > { %3640 = vmatprep.mubr.msk.f32.mxu0 %vm275_vm0, %v3217_v34 }
  0x53   : > { %3641 = vmatmul.mubr.msk.f32.gmra.mrb[4].mxu0 %vm275_vm0, %v3218_v35 }
  0x54   : > { %3643 = vmatprep.mubr.msk.f32.mxu0 %vm275_vm0, %v3219_v36 }
  0x57   : > { %3644 = vmatmul.mubr.msk.f32.gmra.mrb[6].mxu0 %vm275_vm0, %v3220_v37 }
  0x58   : > { %3648 = vmatprep.mubr.msk.f32.mxu0 %vm275_vm0, %v4339_v38 }
  0x5b   : > { %3649 = vmatmul.mubr.msk.f32.vlgmr.msra.gmra.mrb[0].mxu0 %vm275_vm0, %v4345_v39 }
  0x5c   : > { %3661 = vmatpush3.msra.mxu0 %v3255_v32  ;;  %3651 = vmatprep.mubr.msk.f32.mxu0 %vm275_vm0, %v4348_v40 }
  0x5d   : > { %3674 = vmatprep.subr.mxu0 %v3272_v41 }
  0x5f   : > { %3652 = vmatmul.mubr.msk.f32.gmra.mrb[2].mxu0 %vm275_vm0, %v4358_v42 }
  0x60   : > { %3654 = vmatprep.mubr.msk.f32.mxu0 %vm275_vm0, %v4361_v43 }
  0x63   : > { %3655 = vmatmul.mubr.msk.f32.gmra.mrb[4].mxu0 %vm275_vm0, %v4368_v44 }
  0x64   : > { %3657 = vmatprep.mubr.msk.f32.mxu0 %vm275_vm0, %v4371_v45 }
  0x67   : > { %3658 = vmatmul.mubr.msk.f32.gmra.mrb[6].mxu0 %vm275_vm0, %v4378_v46 }
  0x68   : > { %3662 = vmatprep.mubr.msk.f32.mxu0 %vm275_vm0, %v3247_v47  ;;  %v3334_v47 = vld [vmem:[%s4758_s2 + $0x10] sm:$0xff] }
  0x6b   : > { %3663 = vmatmul.mubr.msk.f32.vlgmr.msra.gmra.mrb[0].mxu0 %vm275_vm0, %v3248_v48 }
  0x6c   : > { %3675 = vmatpush3.msra.mxu0 %v3272_v41  ;;  %3665 = vmatprep.mubr.msk.f32.mxu0 %vm275_vm0, %v3249_v49  ;;  %v1635_v49 = vld [vmem:[#allocation2] sm:$0xff] }
  0x6d   : > { %3688 = vmatprep.subr.mxu0 %v3289_v50 }
  0x6f   : > { %3666 = vmatmul.mubr.msk.f32.gmra.mrb[2].mxu0 %vm275_vm0, %v3250_v51 }
  0x70   : > { %3668 = vmatprep.mubr.msk.f32.mxu0 %vm275_vm0, %v3251_v52  ;;  %v3343_v52 = vld [vmem:[%s4758_s2 + $0x18] sm:$0xff] }
  0x73   : > { %3669 = vmatmul.mubr.msk.f32.gmra.mrb[4].mxu0 %vm275_vm0, %v3252_v53 }
  0x74   : > { %3671 = vmatprep.mubr.msk.f32.mxu0 %vm275_vm0, %v3253_v54 }
  0x77   : > { %3672 = vmatmul.mubr.msk.f32.gmra.mrb[6].mxu0 %vm275_vm0, %v3254_v55 }
  0x78   : > { %3676 = vmatprep.mubr.msk.f32.mxu0 %vm275_vm0, %v4243_v12 }
  0x7b   : > { %3677 = vmatmul.mubr.msk.f32.vlgmr.msra.gmra.mrb[0].mxu0 %vm275_vm0, %v4246_v13 }
  0x7c   : > { %3689 = vmatpush3.msra.mxu0 %v3289_v50  ;;  %3679 = vmatprep.mubr.msk.f32.mxu0 %vm275_vm0, %v4256_v15 }
  0x7d   : > { %3702 = vmatprep.subr.mxu0 %v3306_v56 }
  0x7f   : > { %3680 = vmatmul.mubr.msk.f32.gmra.mrb[2].mxu0 %vm275_vm0, %v4259_v16 }
  0x80   : > { %3682 = vmatprep.mubr.msk.f32.mxu0 %vm275_vm0, %v4266_v17 }
  0x83   : > { %3683 = vmatmul.mubr.msk.f32.gmra.mrb[4].mxu0 %vm275_vm0, %v4269_v18 }
  0x84   : > { %3685 = vmatprep.mubr.msk.f32.mxu0 %vm275_vm0, %v4276_v19 }
  0x87   : > { %3686 = vmatmul.mubr.msk.f32.gmra.mrb[6].mxu0 %vm275_vm0, %v3271_v57 }
  0x88   : > { %3690 = vmatprep.mubr.msk.f32.mxu0 %vm275_vm0, %v4202_v3 }
  0x8b   : > { %3691 = vmatmul.mubr.msk.f32.vlgmr.msra.gmra.mrb[0].mxu0 %vm275_vm0, %v4205_v4 }
  0x8c   : > { %3703 = vmatpush3.msra.mxu0 %v3306_v56  ;;  %3693 = vmatprep.mubr.msk.f32.mxu0 %vm275_vm0, %v4216_v6 }
  0x8d   : > { %3716 = vmatprep.subr.mxu0 %v3317_v61 }
  0x8f   : > { %3694 = vmatmul.mubr.msk.f32.gmra.mrb[2].mxu0 %vm275_vm0, %v4219_v7 }
  0x90   : > { %3696 = vmatprep.mubr.msk.f32.mxu0 %vm275_vm0, %v4226_v8 }
  0x93   : > { %3697 = vmatmul.mubr.msk.f32.gmra.mrb[4].mxu0 %vm275_vm0, %v4229_v9 }
  0x94   : > { %3699 = vmatprep.mubr.msk.f32.mxu0 %vm275_vm0, %v4236_v10 }
  0x97   : > { %3700 = vmatmul.mubr.msk.f32.gmra.mrb[6].mxu0 %vm275_vm0, %v3288_v58  ;;  %v1912_v58 = vld [vmem:[#allocation2 + $0x2] sm:$0xff] }
  0x98   : > { %3704 = vmatprep.mubr.msk.f32.mxu0 %vm275_vm0, %v4283_v21 }
  0x9b   : > { %3705 = vmatmul.mubr.msk.f32.vlgmr.msra.gmra.mrb[0].mxu0 %vm275_vm0, %v4286_v22 }
  0x9c   : > { %3707 = vmatprep.mubr.msk.f32.mxu0 %vm275_vm0, %v4296_v24  ;;  %3717 = vmatpush3.msra.mxu0 %v3317_v61  ;;  %v3352_v61 = vld [vmem:[%s4758_s2 + $0x20] sm:$0xff] }
  0x9f   : > { %3708 = vmatmul.mubr.msk.f32.gmra.mrb[2].mxu0 %vm275_vm0, %v4299_v25 }
  0xa0   : > { %3710 = vmatprep.mubr.msk.f32.mxu0 %vm275_vm0, %v4306_v26 }
  0xa3   : > { %3711 = vmatmul.mubr.msk.f32.gmra.mrb[4].mxu0 %vm275_vm0, %v4309_v27 }
  0xa4   : > { %3713 = vmatprep.mubr.msk.f32.mxu0 %vm275_vm0, %v4316_v28 }
  0xa7   : > { %3714 = vmatmul.mubr.msk.f32.gmra.mrb[6].mxu0 %vm275_vm0, %v3305_v59 }
  0xa8   : > { %3718 = vmatprep.mubr.msk.f32.mxu0 %vm275_vm0, %v1644_v62 }
 0x16e   : > { %v3706_v1 = vpop.f32.mrb[0].mxu0 }
 0x16f   : > { %v1575_v3 = vmul.f32 %v3706_v1, %v3315_v0  ;;  %v1520_v4 = vpop.f32.mrb[1].mxu0 }
 0x170   : > { %v1574_v5 = vmul.f32 %v3315_v0, %v1520_v4  ;;  %v3361_v4 = vld [vmem:[%s4758_s2 + $0x28] sm:$0xff] }
 0x171   : > { %v1590_v6 = vadd.f32 %v3316_v2, %v1575_v3 }
 0x172   : > { %v1589_v7 = vadd.f32 %v3316_v2, %v1574_v5  ;;  %v3709_v8 = vpop.f32.mrb[2].mxu0 }
 0x173   : > { %v1598_v9 = vmax.f32 %v1590_v6, 0.0  ;;  %v1577_v10 = vmul.f32 %v3709_v8, %v3315_v0  ;;  %v1530_v11 = vpop.f32.mrb[3].mxu0  ;;  %v3370_v6 = vld [vmem:[%s4758_s2 + $0x30] sm:$0xff]  ;;  %v3379_v8 = vld [vmem:[%s4758_s2 + $0x38] sm:$0xff] }
 0x174   : > { %v1597_v12 = vmax.f32 %v1589_v7, 0.0  ;;  %v1576_v13 = vmul.f32 %v3315_v0, %v1530_v11  ;;  %v2508_v11 = vld [vmem:[#allocation2 + $0x90] sm:$0xff] }
 0x175   : > { %1628 = vst.msk [vmem:[#allocation2 + $0x21] sm:$0xff] %vm275_vm0, %v1598_v9  ;;  %v1592_v14 = vadd.f32 %v3316_v2, %v1577_v10  ;;  %v3388_v10 = vld [vmem:[%s4758_s2 + $0x40] sm:$0xff] }
 0x176   : > { %1627 = vst.msk [vmem:[#allocation2 + $0x11] sm:$0xff] %vm275_vm0, %v1597_v12  ;;  %v1591_v15 = vadd.f32 %v3316_v2, %v1576_v13  ;;  %v3712_v16 = vpop.f32.mrb[4].mxu0  ;;  %v2950_v12 = vld [vmem:[%s4759_s3] sm:$0xff]  ;;  %v2655_v13 = vld [vmem:[#allocation2 + $0x91] sm:$0xff] }
 0x177   : > { %v1600_v17 = vmax.f32 %v1592_v14, 0.0  ;;  %v1579_v18 = vmul.f32 %v3712_v16, %v3315_v0  ;;  %v1540_v19 = vpop.f32.mrb[5].mxu0  ;;  %v2802_v14 = vld [vmem:[#allocation2 + $0x92] sm:$0xff] }
 0x178   : > { %v1599_v20 = vmax.f32 %v1591_v15, 0.0  ;;  %v1578_v21 = vmul.f32 %v3315_v0, %v1540_v19 }
 0x179   : > { %1630 = vst.msk [vmem:[#allocation2 + $0x41] sm:$0xff] %vm275_vm0, %v1600_v17  ;;  %v1594_v22 = vadd.f32 %v3316_v2, %v1579_v18 }
 0x17a   : > { %1629 = vst.msk [vmem:[#allocation2 + $0x31] sm:$0xff] %vm275_vm0, %v1599_v20  ;;  %v1593_v23 = vadd.f32 %v3316_v2, %v1578_v21  ;;  %v3715_v24 = vpop.f32.mrb[6].mxu0 }
 0x17b   : > { %v1602_v25 = vmax.f32 %v1594_v22, 0.0  ;;  %v1581_v26 = vmul.f32 %v3715_v24, %v3315_v0  ;;  %v1550_v27 = vpop.f32.mrb[7].mxu0 }
 0x17c   : > { %v1601_v28 = vmax.f32 %v1593_v23, 0.0  ;;  %v1580_v29 = vmul.f32 %v3315_v0, %v1550_v27  ;;  %v4495_v33 = vld [vmem:[#allocation2 + $0x21] sm:$0xff] }
 0x17d   : > { %1632 = vst.msk [vmem:[#allocation2 + $0x61] sm:$0xff] %vm275_vm0, %v1602_v25  ;;  %v1596_v30 = vadd.f32 %v3316_v2, %v1581_v26  ;;  %v4490_v31 = vld [vmem:[#allocation2 + $0x11] sm:$0xff]  ;;  %v4529_v53 = vld [vmem:[#allocation2 + $0x20] sm:$0xff] }
 0x17e   : > { %1631 = vst.msk [vmem:[#allocation2 + $0x51] sm:$0xff] %vm275_vm0, %v1601_v28  ;;  %v1595_v32 = vadd.f32 %v3316_v2, %v1580_v29  ;;  %3719 = vmatmul.mubr.msk.f32.vlgmr.msra.gmra.mrb[8].mxu0 %vm275_vm0, %v4490_v31  ;;  %v1636_v51 = vld [vmem:[#allocation2 + $0x10] sm:$0xff]  ;;  %v4558_v62 = vld [vmem:[#allocation2 + $0x22] sm:$0xff] }
 0x17f   : > { %v1604_v34 = vmax.f32 %v1596_v30, 0.0  ;;  %3721 = vmatprep.mubr.msk.f32.mxu0 %vm275_vm0, %v4495_v33  ;;  %v1913_v60 = vld [vmem:[#allocation2 + $0x12] sm:$0xff] }
 0x180   : > { %v1603_v35 = vmax.f32 %v1595_v32, 0.0  ;;  %v4499_v36 = vld [vmem:[#allocation2 + $0x41] sm:$0xff] }
 0x181   : > { %1634 = vst.msk [vmem:[#allocation2 + $0x81] sm:$0xff] %vm275_vm0, %v1604_v34  ;;  %3724 = vmatprep.mubr.msk.f32.mxu1 %vm275_vm0, %v4499_v36  ;;  %v4504_v37 = vld [vmem:[#allocation2 + $0x31] sm:$0xff]  ;;  %v4537_v55 = vld [vmem:[#allocation2 + $0x40] sm:$0xff] }
 0x182   : > { %1633 = vst.msk [vmem:[#allocation2 + $0x71] sm:$0xff] %vm275_vm0, %v1603_v35  ;;  %3722 = vmatmul.mubr.msk.f32.gmra.mrb[10].mxu0 %vm275_vm0, %v4504_v37  ;;  %v4533_v54 = vld [vmem:[#allocation2 + $0x30] sm:$0xff]  ;;  %v4566_v0 = vld [vmem:[#allocation2 + $0x42] sm:$0xff] }
 0x184   : > { %v4516_v48 = vld [vmem:[#allocation2 + $0x61] sm:$0xff] }
 0x185   : > { %v4509_v41 = vld [vmem:[#allocation2 + $0x51] sm:$0xff]  ;;  %v4545_v57 = vld [vmem:[#allocation2 + $0x60] sm:$0xff] }
 0x186   : > { %3725 = vmatmul.mubr.msk.f32.vlgmr.msra.gmra.mrb[0].mxu1 %vm275_vm0, %v4509_v41  ;;  %v4541_v56 = vld [vmem:[#allocation2 + $0x50] sm:$0xff]  ;;  %v4574_v2 = vld [vmem:[#allocation2 + $0x62] sm:$0xff] }
 0x187   : > { %3731 = vmatpush3.msra.mxu1 %v1643_v63  ;;  %3727 = vmatprep.mubr.msk.f32.mxu1 %vm275_vm0, %v4516_v48  ;;  %v4562_v63 = vld [vmem:[#allocation2 + $0x32] sm:$0xff] }
 0x188   : > { %3744 = vmatprep.subr.mxu1 %v3334_v47  ;;  %v4570_v1 = vld [vmem:[#allocation2 + $0x52] sm:$0xff]  ;;  %v2066_v5 = vld [vmem:[#allocation2 + $0x80] sm:$0xff] }
 0x189   : > { %v4520_v50 = vld [vmem:[#allocation2 + $0x71] sm:$0xff]  ;;  %v2213_v7 = vld [vmem:[#allocation2 + $0x81] sm:$0xff] }
 0x18a   : > { %3728 = vmatmul.mubr.msk.f32.gmra.mrb[2].mxu1 %vm275_vm0, %v4520_v50  ;;  %v4549_v59 = vld [vmem:[#allocation2 + $0x70] sm:$0xff]  ;;  %v2360_v9 = vld [vmem:[#allocation2 + $0x82] sm:$0xff] }
 0x18b   : > { %3732 = vmatprep.mubr.msk.f32.mxu1 %vm275_vm0, %v1635_v49  ;;  %v4578_v3 = vld [vmem:[#allocation2 + $0x72] sm:$0xff] }
 0x18e   : > { %3733 = vmatmul.mubr.msk.f32.vlgmr.msra.gmra.mrb[4].mxu1 %vm275_vm0, %v1636_v51 }
 0x18f   : > { %3745 = vmatpush3.msra.mxu1 %v3334_v47  ;;  %3735 = vmatprep.mubr.msk.f32.mxu1 %vm275_vm0, %v4529_v53 }
 0x190   : > { %3758 = vmatprep.subr.mxu1 %v3343_v52 }
 0x192   : > { %3736 = vmatmul.mubr.msk.f32.gmra.mrb[6].mxu1 %vm275_vm0, %v4533_v54 }
 0x193   : > { %3738 = vmatprep.mubr.msk.f32.mxu1 %vm275_vm0, %v4537_v55 }
 0x196   : > { %3739 = vmatmul.mubr.msk.f32.gmra.mrb[0].mxu1 %vm275_vm0, %v4541_v56 }
 0x197   : > { %3741 = vmatprep.mubr.msk.f32.mxu1 %vm275_vm0, %v4545_v57 }
 0x19a   : > { %3742 = vmatmul.mubr.msk.f32.gmra.mrb[2].mxu1 %vm275_vm0, %v4549_v59 }
 0x19b   : > { %3746 = vmatprep.mubr.msk.f32.mxu1 %vm275_vm0, %v1912_v58 }
 0x19e   : > { %3747 = vmatmul.mubr.msk.f32.vlgmr.msra.gmra.mrb[4].mxu1 %vm275_vm0, %v1913_v60 }
 0x19f   : > { %3759 = vmatpush3.msra.mxu1 %v3343_v52  ;;  %3749 = vmatprep.mubr.msk.f32.mxu1 %vm275_vm0, %v4558_v62 }
 0x1a0   : > { %3772 = vmatprep.subr.mxu1 %v3352_v61 }
 0x1a2   : > { %3750 = vmatmul.mubr.msk.f32.gmra.mrb[6].mxu1 %vm275_vm0, %v4562_v63 }
 0x1a3   : > { %3752 = vmatprep.mubr.msk.f32.mxu1 %vm275_vm0, %v4566_v0 }
 0x1a6   : > { %3753 = vmatmul.mubr.msk.f32.gmra.mrb[0].mxu1 %vm275_vm0, %v4570_v1 }
 0x1a7   : > { %3755 = vmatprep.mubr.msk.f32.mxu1 %vm275_vm0, %v4574_v2 }
 0x1aa   : > { %3756 = vmatmul.mubr.msk.f32.gmra.mrb[2].mxu1 %vm275_vm0, %v4578_v3 }
 0x1ab   : > { %3760 = vmatprep.mubr.msk.f32.mxu1 %vm275_vm0, %v1636_v51 }
 0x1ae   : > { %3761 = vmatmul.mubr.msk.f32.vlgmr.msra.gmra.mrb[4].mxu1 %vm275_vm0, %v4529_v53 }
 0x1af   : > { %3773 = vmatpush3.msra.mxu1 %v3352_v61  ;;  %3763 = vmatprep.mubr.msk.f32.mxu1 %vm275_vm0, %v4533_v54 }
 0x1b0   : > { %3786 = vmatprep.subr.mxu1 %v3361_v4 }
 0x1b2   : > { %3764 = vmatmul.mubr.msk.f32.gmra.mrb[6].mxu1 %vm275_vm0, %v4537_v55 }
 0x1b3   : > { %3766 = vmatprep.mubr.msk.f32.mxu1 %vm275_vm0, %v4541_v56 }
 0x1b6   : > { %3767 = vmatmul.mubr.msk.f32.gmra.mrb[0].mxu1 %vm275_vm0, %v4545_v57 }
 0x1b7   : > { %3769 = vmatprep.mubr.msk.f32.mxu1 %vm275_vm0, %v4549_v59 }
 0x1ba   : > { %3770 = vmatmul.mubr.msk.f32.gmra.mrb[2].mxu1 %vm275_vm0, %v2066_v5 }
 0x1bb   : > { %3774 = vmatprep.mubr.msk.f32.mxu1 %vm275_vm0, %v4490_v31 }
 0x1be   : > { %3775 = vmatmul.mubr.msk.f32.vlgmr.msra.gmra.mrb[4].mxu1 %vm275_vm0, %v4495_v33 }
 0x1bf   : > { %3787 = vmatpush3.msra.mxu1 %v3361_v4  ;;  %3777 = vmatprep.mubr.msk.f32.mxu1 %vm275_vm0, %v4504_v37 }
 0x1c0   : > { %3800 = vmatprep.subr.mxu1 %v3370_v6 }
 0x1c2   : > { %3778 = vmatmul.mubr.msk.f32.gmra.mrb[6].mxu1 %vm275_vm0, %v4499_v36 }
 0x1c3   : > { %3780 = vmatprep.mubr.msk.f32.mxu1 %vm275_vm0, %v4509_v41 }
 0x1c6   : > { %3781 = vmatmul.mubr.msk.f32.gmra.mrb[0].mxu1 %vm275_vm0, %v4516_v48 }
 0x1c7   : > { %3783 = vmatprep.mubr.msk.f32.mxu1 %vm275_vm0, %v4520_v50 }
 0x1ca   : > { %3784 = vmatmul.mubr.msk.f32.gmra.mrb[2].mxu1 %vm275_vm0, %v2213_v7 }
 0x1cb   : > { %3788 = vmatprep.mubr.msk.f32.mxu1 %vm275_vm0, %v1913_v60 }
 0x1ce   : > { %3789 = vmatmul.mubr.msk.f32.vlgmr.msra.gmra.mrb[4].mxu1 %vm275_vm0, %v4558_v62 }
 0x1cf   : > { %3801 = vmatpush3.msra.mxu1 %v3370_v6  ;;  %3791 = vmatprep.mubr.msk.f32.mxu1 %vm275_vm0, %v4562_v63 }
 0x1d0   : > { %3814 = vmatprep.subr.mxu1 %v3379_v8 }
 0x1d2   : > { %3792 = vmatmul.mubr.msk.f32.gmra.mrb[6].mxu1 %vm275_vm0, %v4566_v0 }
 0x1d3   : > { %3794 = vmatprep.mubr.msk.f32.mxu1 %vm275_vm0, %v4570_v1 }
 0x1d6   : > { %3795 = vmatmul.mubr.msk.f32.gmra.mrb[0].mxu1 %vm275_vm0, %v4574_v2 }
 0x1d7   : > { %3797 = vmatprep.mubr.msk.f32.mxu1 %vm275_vm0, %v4578_v3 }
 0x1da   : > { %3798 = vmatmul.mubr.msk.f32.gmra.mrb[2].mxu1 %vm275_vm0, %v2360_v9 }
 0x1db   : > { %3802 = vmatprep.mubr.msk.f32.mxu1 %vm275_vm0, %v4529_v53 }
 0x1de   : > { %3803 = vmatmul.mubr.msk.f32.vlgmr.msra.gmra.mrb[4].mxu1 %vm275_vm0, %v4533_v54 }
 0x1df   : > { %3815 = vmatpush3.msra.mxu1 %v3379_v8  ;;  %3805 = vmatprep.mubr.msk.f32.mxu1 %vm275_vm0, %v4537_v55 }
 0x1e0   : > { %3828 = vmatprep.subr.mxu1 %v3388_v10 }
 0x1e2   : > { %3806 = vmatmul.mubr.msk.f32.gmra.mrb[6].mxu1 %vm275_vm0, %v4541_v56 }
 0x1e3   : > { %3808 = vmatprep.mubr.msk.f32.mxu1 %vm275_vm0, %v4545_v57 }
 0x1e6   : > { %3809 = vmatmul.mubr.msk.f32.gmra.mrb[0].mxu1 %vm275_vm0, %v4549_v59 }
 0x1e7   : > { %3811 = vmatprep.mubr.msk.f32.mxu1 %vm275_vm0, %v2066_v5 }
 0x1ea   : > { %3812 = vmatmul.mubr.msk.f32.gmra.mrb[2].mxu1 %vm275_vm0, %v2508_v11 }
 0x1eb   : > { %3816 = vmatprep.mubr.msk.f32.mxu1 %vm275_vm0, %v4495_v33 }
 0x1ee   : > { %3817 = vmatmul.mubr.msk.f32.vlgmr.msra.gmra.mrb[4].mxu1 %vm275_vm0, %v4504_v37 }
 0x1ef   : > { %3829 = vmatpush3.msra.mxu1 %v3388_v10  ;;  %3819 = vmatprep.mubr.msk.f32.mxu1 %vm275_vm0, %v4499_v36 }
 0x1f0   : > { %3842 = vmatprep.subr.mxu1 %v2950_v12 }
 0x1f2   : > { %3820 = vmatmul.mubr.msk.f32.gmra.mrb[6].mxu1 %vm275_vm0, %v4509_v41 }
 0x1f3   : > { %3822 = vmatprep.mubr.msk.f32.mxu1 %vm275_vm0, %v4516_v48 }
 0x1f6   : > { %3823 = vmatmul.mubr.msk.f32.gmra.mrb[0].mxu1 %vm275_vm0, %v4520_v50 }
 0x1f7   : > { %3825 = vmatprep.mubr.msk.f32.mxu1 %vm275_vm0, %v2213_v7 }
 0x1fa   : > { %3826 = vmatmul.mubr.msk.f32.gmra.mrb[2].mxu1 %vm275_vm0, %v2655_v13 }
 0x1fb   : > { %3830 = vmatprep.mubr.msk.f32.mxu1 %vm275_vm0, %v4558_v62 }
 0x1fe   : > { %3831 = vmatmul.mubr.msk.f32.vlgmr.msra.gmra.mrb[4].mxu1 %vm275_vm0, %v4562_v63 }
 0x1ff   : > { %3843 = vmatpush3.msra.mxu1 %v2950_v12  ;;  %3833 = vmatprep.mubr.msk.f32.mxu1 %vm275_vm0, %v4566_v0 }
 0x202   : > { %3834 = vmatmul.mubr.msk.f32.gmra.mrb[6].mxu1 %vm275_vm0, %v4570_v1 }
 0x203   : > { %3836 = vmatprep.mubr.msk.f32.mxu1 %vm275_vm0, %v4574_v2 }
 0x206   : > { %3837 = vmatmul.mubr.msk.f32.gmra.mrb[0].mxu1 %vm275_vm0, %v4578_v3 }
 0x207   : > { %3839 = vmatprep.mubr.msk.f32.mxu1 %vm275_vm0, %v2360_v9 }
 0x20a   : > { %3840 = vmatmul.mubr.msk.f32.gmra.mrb[2].mxu1 %vm275_vm0, %v2802_v14 }
 0x20b   : > { %3844 = vmatprep.mubr.msk.f32.mxu1 %vm275_vm0, %v4339_v38 }
 0x20e   : > { %3845 = vmatmul.mubr.msk.f32.vlgmr.msra.gmra.mrb[4].mxu1 %vm275_vm0, %v4345_v39 }
 0x20f   : > { %3847 = vmatprep.mubr.msk.f32.mxu1 %vm275_vm0, %v4348_v40 }
 0x212   : > { %3848 = vmatmul.mubr.msk.f32.gmra.mrb[6].mxu1 %vm275_vm0, %v4358_v42 }
 0x213   : > { %3850 = vmatprep.mubr.msk.f32.mxu1 %vm275_vm0, %v4361_v43 }
 0x216   : > { %3851 = vmatmul.mubr.msk.f32.gmra.mrb[0].mxu1 %vm275_vm0, %v4368_v44 }
 0x217   : > { %3853 = vmatprep.mubr.msk.f32.mxu1 %vm275_vm0, %v4371_v45 }
 0x21a   : > { %3854 = vmatmul.mubr.msk.f32.gmra.mrb[2].mxu1 %vm275_vm0, %v4378_v46 }
 0x251   : > { %v3720_v38 = vpop.f32.mrb[8].mxu0 }
 0x252   : > { %v1744_v39 = vpop.f32.mrb[9].mxu0 }
 0x255   : > { %v3723_v15 = vpop.f32.mrb[10].mxu0 }
 0x256   : > { %v1754_v16 = vpop.f32.mrb[11].mxu0 }
 0x2e1   : > { %v3846_v40 = vpop.f32.mrb[4].mxu1 }
 0x2e2   : > { %v3858_v42 = vadd.f32 %v3846_v40, %v3720_v38  ;;  %v3041_v17 = vpop.f32.mrb[5].mxu1 }
 0x2e3   : > { %v3859_v43 = vadd.f32 %v3041_v17, %v1744_v39 }
 0x2e4   : > { %3089 = vst.msk [vmem:[%s247_s13 + $0x8] sm:$0xff] %vm275_vm0, %v3858_v42 }
 0x2e5   : > { %3088 = vst.msk [vmem:[%s247_s13] sm:$0xff] %vm275_vm0, %v3859_v43  ;;  %v3849_v44 = vpop.f32.mrb[6].mxu1 }
 0x2e6   : > { %v3860_v45 = vadd.f32 %v3849_v44, %v3723_v15  ;;  %v3051_v18 = vpop.f32.mrb[7].mxu1 }
 0x2e7   : > { %v3861_v46 = vadd.f32 %v3051_v18, %v1754_v16 }
 0x2e8   : > { %3091 = vst.msk [vmem:[%s247_s13 + $0x18] sm:$0xff] %vm275_vm0, %v3860_v45 }
 0x2e9   : > { %3090 = vst.msk [vmem:[%s247_s13 + $0x10] sm:$0xff] %vm275_vm0, %v3861_v46  ;;  %v3852_v19 = vpop.f32.mrb[0].mxu1 }
 0x2ea   : > { %3093 = vst.msk [vmem:[%s247_s13 + $0x28] sm:$0xff] %vm275_vm0, %v3852_v19  ;;  %v3061_v20 = vpop.f32.mrb[1].mxu1 }
 0x2eb   : > { %3092 = vst.msk [vmem:[%s247_s13 + $0x20] sm:$0xff] %vm275_vm0, %v3061_v20 }
 0x2ed   : > { %v3855_v21 = vpop.f32.mrb[2].mxu1 }
 0x2ee   : > { %3095 = vst.msk [vmem:[%s247_s13 + $0x38] sm:$0xff] %vm275_vm0, %v3855_v21  ;;  %v3071_v22 = vpop.f32.mrb[3].mxu1 }
 0x2ef   : > { %3094 = vst.msk [vmem:[%s247_s13 + $0x30] sm:$0xff] %vm275_vm0, %v3071_v22 }
 0x2f0   : > { %4050 = shalt.err (!%p4047_p3)
}
 0x2f1   : > { %s4051_s29 = scalar_lea.hbm %s4709_s18, 1024  ;;  %s4055_s11 = scalar_lea.hbm %s4762_s6, 2048 }
 0x2f2   : > { %p4052_p4 = scmp.ne.s32.totalorder %s4709_s18, %s4051_s29  ;;  %p4056_p9 = scmp.lt.u32.totalorder %s4709_s18, %s4762_s6 }
 0x2f3   : > { %p4057_p10 = scmp.lt.u32.totalorder %s4055_s11, %s4051_s29  ;;  %p4059_p12 = scmp.lt.u32.totalorder %s4051_s29, %s4709_s18 }
 0x2f4   : > { %p4053_p7 = pnand %p4052_p4, %p4178_p5 }
 0x2f5   : > { %p4058_p11 = por %p4057_p10, %p4056_p9 }
 0x2f6   : > { %p4054_p8 = pneg %p4053_p7 }
 0x2f7   : > { %p4060_p13 = por %p4059_p12, %p4058_p11 }
 0x2f9   : > { %p4061_p0 = pnand %p4060_p13, %p4054_p8 }
 0x2fb   : > { %4064 = shalt.err (!%p4061_p0)
}
 0x2fc   : > { %s4103_s14 = smov 128   ;;  %s4104_s16 = smov 8  }
 0x2fd   : > { %3995 = dma.vmem_to_hbm [thread:$0]  (%p4178_p5), %s4711_s15, 1024, %s4709_s18, %s4715_s25, %s4103_s14, %s4103_s14, %s4104_s16  }
 0x2fe PF: > { %p4001_p1 = scmp.ge.s32.totalorder %s4099_s24, 2  ;;  %s3125_s17 = sand.u32 1, %s4087_s21  }
 0x2ff   : > { %s3126_s19 = scalar_lea.sflag [#allocation4], %s3125_s17 }
 0x300   : > { %p3998_p2 = pnand %p4001_p1, %p4182_p6 }
 0x302   : > { %4082 = dma.done.wait (!%p3998_p2), %s3126_s19, 1024  }
 0x303   : > { %4084 = vsyncadd (!%p3998_p2), %s3126_s19, 4294966272  ;;  %p16_p3 = scmp.ge.s32.totalorder %s4165_s27, 4   ;;  %s4765_s21 = smov %s4091_s22 }
 0x304   : > { %s4766_s22 = smov %s4095_s23  ;;  %s4767_s23 = smov %s4176_s30 }
 0x305   : > { %s4768_s24 = smov %s4165_s27  ;;  %18 = sbr.rel (!%p16_p3) target bundleno = 3 (0x3), region = 102 }
 0x30c   :  { %3131 = vsyncpa [#allocation4], 1 }
 0x30d   :  { %3133 = vsyncpa [#allocation4 + $0x1], 1 }

</bundles_post_ra>
